<compile_context>
chip_gen: v7x
topology: tpu7x:2x2x1
jax: 0.10.0
libtpu: 0.0.40
codegen_flags: <defaults>
</compile_context>

<pallas_src>
import functools
import numpy as np
import jax
import jax.numpy as jnp
from jax import lax
from jax.experimental import pallas as pl
from jax.experimental.pallas import tpu as pltpu

# ------------------------------ constants ----------------------------------

GRID_H = GRID_W = 16
HW = GRID_H * GRID_W
VOXEL_SIZE = (4.0, 4.0, 4.0)
LIDAR_RANGE = (-32.0, -32.0, -3.0, 32.0, 32.0, 1.0)
ANCHOR_NUM = 2
CONF_THRE = 0.01

# channel layout inside the lane-dense (128-wide) packed head output
HEAD_PAD = 128
CLS_SL = slice(0, ANCHOR_NUM)                               # 0:2
REG_SL = slice(ANCHOR_NUM, ANCHOR_NUM + 7 * ANCHOR_NUM)     # 2:16
FLOW_SL = slice(16, 18)
STATE_SL = slice(18, 20)
CONF_LANE = 20                                              # sigmoid(max cls)


# ----------------------- host-side constant builders ------------------------

def _np_down2_select(H, W):
    """One-hot (H//2*W//2, H*W) matrix selecting even (h, w) positions."""
    Ho, Wo = H // 2, W // 2
    m = np.zeros((Ho * Wo, H * W), np.float32)
    r = np.arange(Ho * Wo)
    src = (r // Wo) * (2 * W) + (r % Wo) * 2
    m[r, src] = 1.0
    return m


def _np_up_select(h, w, f):
    """One-hot (f*h*f*w, h*w) nearest-neighbour upsample matrix."""
    H, W = h * f, w * f
    m = np.zeros((H * W, h * w), np.float32)
    r = np.arange(H * W)
    src = (r // (W * f)) * w + ((r % W) // f)
    m[r, src] = 1.0
    return m


def _np_conv3x3_mask(H, W, Cin):
    """(H*W, 9*Cin) 'same'-padding validity mask, pre-broadcast over Cin."""
    hw = H * W
    hh = np.arange(hw) // W
    ww = np.arange(hw) % W
    cols = []
    for dh in range(3):
        for dw in range(3):
            v = ((hh + dh - 1 >= 0) & (hh + dh - 1 < H) &
                 (ww + dw - 1 >= 0) & (ww + dw - 1 < W)).astype(np.float32)
            cols.append(np.repeat(v[:, None], Cin, axis=1))
    return np.concatenate(cols, axis=1)


# ----------------------------- Pallas kernels -------------------------------

def _pfn_kernel(x_ref, w_ref, b_ref, o_ref, *, n_pts):
    # x: (tp*n_pts, 11) f32  (feature 10 is the -1e9 pad-row offset column)
    # w: (11, 64) bf16 (row 10 = ones passthrough) ; b: (1, 64) f32
    # o: (tp, 64) f32
    x = x_ref[...]
    z = jnp.dot(x.astype(jnp.bfloat16), w_ref[...],
                preferred_element_type=jnp.float32)
    z = z + b_ref[...]                              # padded rows sit at ~-1e9
    tp = z.shape[0] // n_pts
    z = jnp.max(z.reshape(tp, n_pts, z.shape[-1]), axis=1)   # masked max / pillar
    o_ref[...] = jnp.maximum(z, 0.0)                # ReLU after max (monotone)


def _backbone_heads_kernel(x_ref,
                           m16_ref, m8_ref,
                           sd16_ref, sd8_ref, su2_ref, su4_ref,
                           b1w_ref, b2w_ref, b3w_ref,
                           d1w_ref, d2w_ref, d3w_ref,
                           shw_ref, hdw_ref, fsw_ref, bias_ref,
                           o_ref):
    """Whole BEV backbone + shrink + (cls|reg|flow|state|conf) heads, one agent.

    x: (1, 256, 64) f32 flattened 16x16x64 BEV tile.
    Output: (1, 256, 128) f32 packed, lane-dense head maps.
    """
    bf16 = jnp.bfloat16
    x = x_ref[0]                                              # (256, 64)
    bias = bias_ref[...]                                      # (8, 256) f32 slab
    b1b = bias[0:1, 0:64]
    b2b = bias[1:2, 0:128]
    b3b = bias[2:3, 0:256]
    d1b = bias[3:4, 0:128]
    d2b = bias[4:5, 0:128]
    d3b = bias[5:6, 0:128]
    shb = bias[6:7, 0:256]
    hdb = bias[7:8, 0:128]

    def conv3x3(xf, H, W, mask, w_ref, b):
        """Stride-1 'same' 3x3 conv as ONE wide-K bf16 matmul (f32 acc)."""
        HWn = xf.shape[0]
        taps = []
        for dh in range(3):
            for dw in range(3):
                s = (dh - 1) * W + (dw - 1)
                taps.append(xf if s == 0
                            else pltpu.roll(xf, (-s) % HWn, axis=0))
        stacked = (jnp.concatenate(taps, axis=-1) * mask).astype(bf16)
        y = jnp.dot(stacked, w_ref[...], preferred_element_type=jnp.float32)
        return jnp.maximum(y + b, 0.0)

    m16 = m16_ref[...]                                        # (256, 576) f32
    m8 = m8_ref[...]                                          # (64, 1152) f32

    # block 1: 3x3 s1 64->64 @ 16x16
    x1 = conv3x3(x, 16, 16, m16, b1w_ref, b1b)                # (256, 64)
    # block 2: 3x3 s2 64->128 : stride-1 conv then even-index selection (MXU)
    y2 = conv3x3(x1, 16, 16, m16, b2w_ref, b2b)               # (256, 128)
    x2 = jnp.dot(sd16_ref[...], y2.astype(bf16),
                 preferred_element_type=jnp.float32)          # (64, 128)
    # block 3: 3x3 s2 128->256 @ 8x8
    y3 = conv3x3(x2, 8, 8, m8, b3w_ref, b3b)                  # (64, 256)
    x3 = jnp.dot(sd8_ref[...], y3.astype(bf16),
                 preferred_element_type=jnp.float32)          # (16, 256)

    # deblocks: 1x1 conv + nearest-neighbour upsample (one-hot matmul)
    # TODO(synk): ConvTranspose2d deblocks approximated by 1x1 conv + NN upsample.
    u1 = jnp.maximum(jnp.dot(x1.astype(bf16), d1w_ref[...],
                             preferred_element_type=jnp.float32) + d1b, 0.0)
    y2d = jnp.maximum(jnp.dot(x2.astype(bf16), d2w_ref[...],
                              preferred_element_type=jnp.float32) + d2b, 0.0)
    u2 = jnp.dot(su2_ref[...], y2d.astype(bf16),
                 preferred_element_type=jnp.float32)          # (256, 128)
    y3d = jnp.maximum(jnp.dot(x3.astype(bf16), d3w_ref[...],
                              preferred_element_type=jnp.float32) + d3b, 0.0)
    u3 = jnp.dot(su4_ref[...], y3d.astype(bf16),
                 preferred_element_type=jnp.float32)          # (256, 128)

    # shrink conv on the 384-ch concat WITHOUT materializing the f32 concat:
    # three bf16 dots accumulated in f32.
    sh = jnp.dot(u1.astype(bf16), shw_ref[0], preferred_element_type=jnp.float32)
    sh = sh + jnp.dot(u2.astype(bf16), shw_ref[1], preferred_element_type=jnp.float32)
    sh = sh + jnp.dot(u3.astype(bf16), shw_ref[2], preferred_element_type=jnp.float32)
    sh = jnp.maximum(sh + shb, 0.0)                           # (256, 256)

    heads = jnp.dot(sh.astype(bf16), hdw_ref[...],
                    preferred_element_type=jnp.float32)       # cls|reg packed
    fs = jnp.dot(x.astype(bf16), fsw_ref[...],
                 preferred_element_type=jnp.float32)          # flow|state packed
    out = heads + fs + hdb                                    # (256, 128)

    # fused confidence epilogue: sigmoid(max over cls lanes) into CONF_LANE
    cls_max = jnp.max(out[:, CLS_SL], axis=-1, keepdims=True)  # (256, 1)
    conf = 1.0 / (1.0 + jnp.exp(-cls_max))                     # EUP
    lane = lax.broadcasted_iota(jnp.int32, out.shape, 1)
    o_ref[0] = jnp.where(lane == CONF_LANE, conf, out)         # one 128-lane store


def _fusion_kernel(feat_ref, logit_ref, o_ref, *, thre):
    """where2comm-style confidence-gated softmax fusion (one batch group).

    feat: (1, L, C, HW) f32 (channels on sublanes, HW lane-dense)
    logit: (1, L, HW) f32 (-1e9 for padded agents)
    o:    (1, C, HW) fused features — lane-dense 256-wide stores.
    """
    logit = logit_ref[0]                                       # (L, HW)
    L = logit.shape[0]
    m = jnp.max(logit, axis=0, keepdims=True)
    e = jnp.exp(logit - m)
    inv = pl.reciprocal(jnp.sum(e, axis=0, keepdims=True), approx=True)
    wgt = e * inv                                              # softmax over agents
    l_idx = lax.broadcasted_iota(jnp.int32, logit.shape, 0)
    comm = jnp.logical_and(l_idx >= 1, logit > thre)           # non-ego communicated
    keep = jnp.where(l_idx >= 1, comm.astype(jnp.float32),
                     jnp.ones_like(logit))
    w_eff = wgt * keep                                         # (L, HW)
    acc = feat_ref[0, 0] * w_eff[0:1, :]                       # sublane broadcast
    for l in range(1, L):
        acc = acc + feat_ref[0, l] * w_eff[l:l + 1, :]
    o_ref[0] = acc                                             # (C, HW) lane-dense


# ------------------------------ wrappers ------------------------------------

def _const_spec(shape):
    """Constant-input BlockSpec: same block every grid step, single-buffered."""
    zeros = (0,) * len(shape)
    return pl.BlockSpec(shape, lambda *_, zeros=zeros: zeros,
                        pipeline_mode=pl.Buffered(1))


def pfn_layer(feats_aug, w_aug, b, tp=128):
    """PillarVFE PFN: [P, n_pts, 11] -> [P, 64] (flat matmul + masked max).

    TODO(synk): for production pillar counts raise tp (512-1024) and pack two
    pillars per 128-lane output row for fully lane-dense stores.
    """
    P, n_pts, F = feats_aug.shape
    C = w_aug.shape[1]
    Pp = ((P + tp - 1) // tp) * tp
    fp = jnp.pad(feats_aug, ((0, Pp - P), (0, 0), (0, 0))).reshape(Pp * n_pts, F)
    out = pl.pallas_call(
        functools.partial(_pfn_kernel, n_pts=n_pts),
        out_shape=jax.ShapeDtypeStruct((Pp, C), jnp.float32),
        grid=(Pp // tp,),
        in_specs=[
            pl.BlockSpec((tp * n_pts, F), lambda i: (i, 0)),
            _const_spec(w_aug.shape),
            _const_spec(b.shape),
        ],
        out_specs=pl.BlockSpec((tp, C), lambda i: (i, 0)),
        compiler_params=pltpu.CompilerParams(dimension_semantics=("parallel",)),
    )(fp, w_aug, b)
    return out[:P]


def backbone_heads(x_flat, p):
    """Fused backbone+shrink+heads pass. x_flat: (N, 256, 64) f32 -> (N, 256, 128).

    TODO(synk): on v7x (2 TCs) odd agent counts leave one core ~33% idle for
    the last step; keep agent count per call even (or tile HW with halos) when
    scaling up.
    """
    N = x_flat.shape[0]
    consts = [p['mask16'], p['mask8'],
              p['sel_d16'], p['sel_d8'], p['sel_u2'], p['sel_u4'],
              p['b1_w'], p['b2_w'], p['b3_w'],
              p['d1_w'], p['d2_w'], p['d3_w'],
              p['shrink_w'], p['head_w'], p['fs_w'], p['bias_slab']]
    in_specs = ([pl.BlockSpec((1, HW, 64), lambda i: (i, 0, 0))]
                + [_const_spec(c.shape) for c in consts])
    return pl.pallas_call(
        _backbone_heads_kernel,
        out_shape=jax.ShapeDtypeStruct((N, HW, HEAD_PAD), jnp.float32),
        grid=(N,),
        in_specs=in_specs,
        out_specs=pl.BlockSpec((1, HW, HEAD_PAD), lambda i: (i, 0, 0)),
        compiler_params=pltpu.CompilerParams(
            dimension_semantics=("parallel",),
            vmem_limit_bytes=32 * 1024 * 1024),
    )(x_flat, *consts)


def fuse_agents(feat_g, logit_g, thre=CONF_THRE):
    """Confidence-gated softmax fusion. feat_g: (B, L, C, HW) -> (B, C, HW)."""
    B, L, C, hw = feat_g.shape
    return pl.pallas_call(
        functools.partial(_fusion_kernel, thre=thre),
        out_shape=jax.ShapeDtypeStruct((B, C, hw), jnp.float32),
        grid=(B,),
        in_specs=[
            pl.BlockSpec((1, L, C, hw), lambda b: (b, 0, 0, 0)),
            pl.BlockSpec((1, L, hw), lambda b: (b, 0, 0)),
        ],
        out_specs=pl.BlockSpec((1, C, hw), lambda b: (b, 0, 0)),
        compiler_params=pltpu.CompilerParams(dimension_semantics=("parallel",)),
    )(feat_g, logit_g)


# ------------------------------ parameters ----------------------------------

def init_params(key):
    def w(k, shape, scale=0.05):
        return scale * jax.random.normal(k, shape, jnp.float32)

    ks = jax.random.split(key, 12)
    bf16 = jnp.bfloat16
    p = {}

    # PFN: (10, 64) weight + a passthrough row of ones for the -1e9 pad-offset
    # feature column (masked-max fix; see _pfn_kernel).
    pfn_w = jnp.concatenate([w(ks[0], (10, 64)), jnp.ones((1, 64), jnp.float32)], 0)
    p['pfn_w'] = pfn_w.astype(bf16)                     # (11, 64)
    p['pfn_b'] = jnp.zeros((1, 64), jnp.float32)

    def conv_w(k, cin, cout):                           # (3,3,cin,cout) -> (9*cin, cout)
        return w(k, (3, 3, cin, cout)).reshape(9 * cin, cout).astype(bf16)

    p['b1_w'] = conv_w(ks[1], 64, 64)
    p['b2_w'] = conv_w(ks[2], 64, 128)
    p['b3_w'] = conv_w(ks[3], 128, 256)
    p['d1_w'] = w(ks[4], (64, 128)).astype(bf16)
    p['d2_w'] = w(ks[5], (128, 128)).astype(bf16)
    p['d3_w'] = w(ks[6], (256, 128)).astype(bf16)
    # shrink conv (384->256) split into three 128-ch chunks (u1|u2|u3)
    p['shrink_w'] = w(ks[7], (3, 128, 256)).astype(bf16)

    # cls / reg heads packed lane-dense into a single (256, 128) weight
    head_w = jnp.zeros((256, HEAD_PAD), jnp.float32)
    head_w = head_w.at[:, CLS_SL].set(w(ks[8], (256, ANCHOR_NUM)))
    head_w = head_w.at[:, REG_SL].set(w(ks[9], (256, 7 * ANCHOR_NUM)))
    p['head_w'] = head_w.astype(bf16)

    # flow / state heads (act on the raw 64-ch BEV feature) packed the same way
    fs_w = jnp.zeros((64, HEAD_PAD), jnp.float32)
    fs_w = fs_w.at[:, FLOW_SL].set(w(ks[10], (64, 2)))
    fs_w = fs_w.at[:, STATE_SL].set(w(ks[11], (64, 2)))
    p['fs_w'] = fs_w.astype(bf16)

    # all backbone/head biases packed into one (8, 256) f32 slab:
    # rows: 0=b1(64) 1=b2(128) 2=b3(256) 3=d1 4=d2 5=d3 (128) 6=shrink(256) 7=head(128)
    p['bias_slab'] = jnp.zeros((8, 256), jnp.float32)

    # host-precomputed structural constants (boundary masks + one-hot selects)
    p['mask16'] = jnp.asarray(_np_conv3x3_mask(16, 16, 64), jnp.float32)   # (256, 576)
    p['mask8'] = jnp.asarray(_np_conv3x3_mask(8, 8, 128), jnp.float32)     # (64, 1152)
    p['sel_d16'] = jnp.asarray(_np_down2_select(16, 16), jnp.float32).astype(bf16)  # (64, 256)
    p['sel_d8'] = jnp.asarray(_np_down2_select(8, 8), jnp.float32).astype(bf16)     # (16, 64)
    p['sel_u2'] = jnp.asarray(_np_up_select(8, 8, 2), jnp.float32).astype(bf16)     # (256, 64)
    p['sel_u4'] = jnp.asarray(_np_up_select(4, 4, 4), jnp.float32).astype(bf16)     # (256, 16)
    return p


# -------------------------------- forward -----------------------------------

def forward(params, data):
    vf = data['voxel_features']            # [P, n_pts, 4]
    vc = data['voxel_coords']              # [P, 4] int32 (agent, z, y, x)
    vnp_ = data['voxel_num_points']        # [P]
    record_len = data['record_len']        # python list, len B
    pairwise_t_matrix = data['pairwise_t_matrix']  # [B, L, k, 4, 4]

    # --- PillarVFE: point feature augmentation (JAX glue) + PFN (Pallas) ---
    P, n_pts, _ = vf.shape
    pt_mask = (jnp.arange(n_pts)[None, :] < vnp_[:, None]).astype(jnp.float32)[..., None]
    denom = jnp.maximum(vnp_, 1).astype(jnp.float32)[:, None, None]
    points_mean = jnp.sum(vf[..., :3] * pt_mask, axis=1, keepdims=True) / denom
    f_cluster = vf[..., :3] - points_mean
    vx, vy, vz = VOXEL_SIZE
    x_off = vx / 2 + LIDAR_RANGE[0]
    y_off = vy / 2 + LIDAR_RANGE[1]
    z_off = vz / 2 + LIDAR_RANGE[2]
    cxf = vc[:, 3].astype(jnp.float32)[:, None, None]
    cyf = vc[:, 2].astype(jnp.float32)[:, None, None]
    czf = vc[:, 1].astype(jnp.float32)[:, None, None]
    f_center = jnp.concatenate([vf[..., 0:1] - (cxf * vx + x_off),
                                vf[..., 1:2] - (cyf * vy + y_off),
                                vf[..., 2:3] - (czf * vz + z_off)], axis=-1)
    feats = jnp.concatenate([vf, f_cluster, f_center], axis=-1) * pt_mask  # [P,n_pts,10]
    pad_off = (pt_mask - 1.0) * 1e9                      # 0 for valid, -1e9 for pad
    feats_aug = jnp.concatenate([feats, pad_off], axis=-1)                 # [P,n_pts,11]
    pillar_feat = pfn_layer(feats_aug, params['pfn_w'], params['pfn_b'])   # [P, 64]

    # --- PointPillarScatter ---
    # TODO(synk): data-dependent scatter has no clean Pallas equivalent; kept in JAX.
    n_agents = int(sum(record_len))
    spatial = jnp.zeros((n_agents, GRID_H, GRID_W, 64), jnp.float32)
    spatial = spatial.at[vc[:, 0], vc[:, 2], vc[:, 3]].set(pillar_feat)
    spatial_flat = spatial.reshape(n_agents, HW, 64)

    # --- per-agent backbone + shrink + single heads (+ fused conf) ----------
    heads_single = backbone_heads(spatial_flat, params)        # [N, 256, 128]
    psm_single = heads_single[..., CLS_SL]
    rm_single = heads_single[..., REG_SL]
    conf = heads_single[..., CONF_LANE]                        # [N, 256], sigmoid'ed

    # --- rain_fusion (where2comm-style confidence-gated fusion) ------------
    # TODO(synk): pairwise_t_matrix affine warping and raindrop temporal
    # attention / compensation are not implemented; confidence-gated softmax
    # fusion only.
    B = len(record_len)
    Lmax = pairwise_t_matrix.shape[1]
    offsets = np.concatenate([[0], np.cumsum(np.asarray(record_len))]).astype(np.int32)
    gidx = np.zeros((B, Lmax), np.int32)
    vmask = np.zeros((B, Lmax), np.bool_)
    for b in range(B):
        for l in range(int(record_len[b])):
            gidx[b, l] = offsets[b] + l
            vmask[b, l] = True
    gidx_j = jnp.asarray(gidx)
    vmask_j = jnp.asarray(vmask)

    feat_chw = jnp.transpose(spatial_flat, (0, 2, 1))           # [N, 64, 256]
    feat_g = feat_chw[gidx_j]                                   # [B, L, 64, 256]
    logit_g = jnp.where(vmask_j[:, :, None], conf[gidx_j], -1e9)  # [B, L, 256]

    fused_chw = fuse_agents(feat_g, logit_g)                    # [B, 64, 256]
    comm_cnt = jnp.sum((logit_g[:, 1:, :] > CONF_THRE).astype(jnp.float32))
    comm_den = float(HW * sum(max(int(r) - 1, 0) for r in record_len))
    communication_rates = comm_cnt / max(comm_den, 1.0)

    # --- fused backbone + shrink + detection / flow / state heads ----------
    fused_flat = jnp.transpose(fused_chw, (0, 2, 1))            # [B, 256, 64]
    heads_fused = backbone_heads(fused_flat, params)            # [B, 256, 128]

    def to_nchw(t):
        n, _, c = t.shape
        return jnp.transpose(t.reshape(n, GRID_H, GRID_W, c), (0, 3, 1, 2))

    return {
        'psm': to_nchw(heads_fused[..., CLS_SL]),
        'rm': to_nchw(heads_fused[..., REG_SL]),
        'flow_preds': to_nchw(heads_fused[..., FLOW_SL]),
        'state_preds': to_nchw(heads_fused[..., STATE_SL]),
        'psm_single': to_nchw(psm_single),
        'rm_single': to_nchw(rm_single),
        'comm_rate': communication_rates,
    }


# ---------------------------------- main -------------------------------------

if __name__ == "__main__":
    key = jax.random.PRNGKey(0)
    k_param, k_pts, k_coord, k_npts = jax.random.split(key, 4)
    params = init_params(k_param)

    record_len = [2, 1]          # B=2 batch groups, 3 agents total
    n_agents = sum(record_len)
    pillars_per_agent = 40
    P = n_agents * pillars_per_agent
    n_pts = 8

    # synthetic pillars
    voxel_features = jax.random.uniform(k_pts, (P, n_pts, 4), jnp.float32,
                                        minval=-1.0, maxval=1.0)
    yx = jax.random.randint(k_coord, (P, 2), 0, GRID_H, dtype=jnp.int32)
    agent_idx = jnp.repeat(jnp.arange(n_agents, dtype=jnp.int32), pillars_per_agent)
    voxel_coords = jnp.stack(
        [agent_idx, jnp.zeros((P,), jnp.int32), yx[:, 0], yx[:, 1]], axis=1)
    voxel_num_points = jax.random.randint(k_npts, (P,), 1, n_pts + 1, dtype=jnp.int32)

    B, Lmax, k_sweep = len(record_len), max(record_len), 1
    pairwise_t_matrix = jnp.tile(jnp.eye(4, dtype=jnp.float32),
                                 (B, Lmax, k_sweep, 1, 1))
    data = {
        'voxel_features': voxel_features,
        'voxel_coords': voxel_coords,
        'voxel_num_points': voxel_num_points,
        'record_len': record_len,
        'pairwise_t_matrix': pairwise_t_matrix,
        'past_k_time_interval': jnp.zeros((n_agents, k_sweep), jnp.float32),
        'flow_gt': jnp.zeros((B, 2, GRID_H, GRID_W), jnp.float32),
    }

    out = forward(params, data)
    jax.block_until_ready(out)
    assert out['psm'].shape == (B, ANCHOR_NUM, GRID_H, GRID_W)
    assert out['rm'].shape == (B, 7 * ANCHOR_NUM, GRID_H, GRID_W)
    assert out['flow_preds'].shape == (B, 2, GRID_H, GRID_W)
    assert out['state_preds'].shape == (B, 2, GRID_H, GRID_W)
    assert out['psm_single'].shape == (n_agents, ANCHOR_NUM, GRID_H, GRID_W)
    assert out['rm_single'].shape == (n_agents, 7 * ANCHOR_NUM, GRID_H, GRID_W)
    print("KERNEL_OK")
</pallas_src>

<mosaic_0001>
module attributes {stable_mosaic.version = 11 : i64} {
  func.func @_pfn_kernel(%arg0: i32, %arg1: memref<1024x11xf32, #tpu.memory_space<vmem>>, %arg2: memref<11x64xbf16, #tpu.memory_space<vmem>>, %arg3: memref<1x64xf32, #tpu.memory_space<vmem>>, %arg4: memref<128x64xf32, #tpu.memory_space<vmem>>) attributes {dimension_semantics = [#tpu.dimension_semantics<parallel>], iteration_bounds = array<i64: 1>, scalar_prefetch = 0 : i64, scratch_operands = 0 : i64, tpu.core_type = #tpu.core_type<tc>, window_params = [{transform_indices = @transform_0, window_bounds = array<i64: 1024, 11>}, {pipeline_mode = #tpu.pipeline_mode<synchronous>, transform_indices = @transform_1, window_bounds = array<i64: 11, 64>}, {pipeline_mode = #tpu.pipeline_mode<synchronous>, transform_indices = @transform_2, window_bounds = array<i64: 1, 64>}, {transform_indices = @transform_3, window_bounds = array<i64: 128, 64>}]} {
    %c0 = arith.constant 0 : index
    %c0_0 = arith.constant 0 : index
    %0 = vector.load %arg1[%c0, %c0_0] : memref<1024x11xf32, #tpu.memory_space<vmem>>, vector<1024x11xf32>
    %1 = arith.truncf %0 : vector<1024x11xf32> to vector<1024x11xbf16>
    %c0_1 = arith.constant 0 : index
    %c0_2 = arith.constant 0 : index
    %2 = vector.load %arg2[%c0_1, %c0_2] : memref<11x64xbf16, #tpu.memory_space<vmem>>, vector<11x64xbf16>
    %cst = arith.constant dense<0.000000e+00> : vector<1024x64xf32>
    %3 = tpu.matmul %1, %2, %cst {dimension_numbers = #tpu.dot_dimension_numbers<[1], [0], [0], [1], [0, 0, 1, 1], [], []>} : vector<1024x11xbf16>, vector<11x64xbf16>, vector<1024x64xf32> -> vector<1024x64xf32>
    %c0_3 = arith.constant 0 : index
    %c0_4 = arith.constant 0 : index
    %4 = vector.load %arg3[%c0_3, %c0_4] : memref<1x64xf32, #tpu.memory_space<vmem>>, vector<1x64xf32>
    %5 = vector.broadcast %4 : vector<1x64xf32> to vector<1024x64xf32>
    %6 = arith.addf %3, %5 : vector<1024x64xf32>
    %7 = vector.shape_cast %6 : vector<1024x64xf32> to vector<128x8x64xf32>
    %cst_5 = arith.constant dense<0xFF800000> : vector<128x64xf32>
    %8 = vector.multi_reduction <maximumf>, %7, %cst_5 [1] : vector<128x8x64xf32> to vector<128x64xf32>
    %cst_6 = arith.constant 0.000000e+00 : f32
    %9 = vector.broadcast %cst_6 : f32 to vector<128x64xf32>
    %10 = arith.maximumf %8, %9 : vector<128x64xf32>
    %c0_7 = arith.constant 0 : index
    %c0_8 = arith.constant 0 : index
    %11 = vector.load %arg4[%c0_7, %c0_8] : memref<128x64xf32, #tpu.memory_space<vmem>>, vector<128x64xf32>
    tpu.vector_store %arg4[%c0_7, %c0_8], %10 {strides = array<i32>} : memref<128x64xf32, #tpu.memory_space<vmem>>, vector<128x64xf32>,
    return
  }
  func.func @transform_0(%arg0: i32) -> (i32, i32) {
    %c0_i32 = arith.constant 0 : i32
    %c0_i32_0 = arith.constant 0 : i32
    return %arg0, %c0_i32 : i32, i32
  }
  func.func @transform_1(%arg0: i32) -> (i32, i32) {
    %c0_i32 = arith.constant 0 : i32
    %c0_i32_0 = arith.constant 0 : i32
    %c0_i32_1 = arith.constant 0 : i32
    return %c0_i32, %c0_i32_0 : i32, i32
  }
  func.func @transform_2(%arg0: i32) -> (i32, i32) {
    %c0_i32 = arith.constant 0 : i32
    %c0_i32_0 = arith.constant 0 : i32
    %c0_i32_1 = arith.constant 0 : i32
    return %c0_i32, %c0_i32_0 : i32, i32
  }
  func.func @transform_3(%arg0: i32) -> (i32, i32) {
    %c0_i32 = arith.constant 0 : i32
    %c0_i32_0 = arith.constant 0 : i32
    return %arg0, %c0_i32 : i32, i32
  }
}

</mosaic_0001>

<bundles_post_ra>
// kernel: tpu_custom_call.1
= control target key start
LH: loop header
LB: loop body
LE: loop exit
PB: predicated region body
PF: predicated region fallthrough
CT: control target
= control target key end

     0   :  { %vm414_vm0 = vcmask 1044480   ;;  %vm415_vm1 = vcmask 1045504   ;;  %v2541_v1 = vmov 65535   ;;  %vm221_vm2 = vcmask 89088   ;;  %s4041_s1 = inlined_call_operand.vmem [shape: bf16[11,64], index: 1, kind: input, shape index: {}]   ;;  %s4042_s0 = inlined_call_operand.vmem [shape: f32[1024,11], index: 0, kind: input, shape index: {}]   ;;  %s4043_s2 = inlined_call_operand.vmem [shape: f32[1,64], index: 2, kind: input, shape index: {}]   ;;  %s4044_s3 = inlined_call_operand.vmem [shape: f32[128,64], index: 3, kind: output, shape index: {}]  }
   0x1   :  { %v2538_v0 = vld [vmem:[%s4041_s1] sm:$0x3f]   ;;  %v416_v2 = vsel %vm414_vm0, 4294967295, %v2541_v1  ;;  %v16_v4 = vld [vmem:[%s4042_s0 + $0x8] sm:$0xff]  ;;  %v17_v9 = vld [vmem:[%s4042_s0 + $0x10] sm:$0xff]  ;;  %vm966_vm3 = vcmask 523264  }
   0x2   :  { %v15_v3 = vld [vmem:[%s4042_s0] sm:$0xff]  ;;  %v417_v6 = vsel %vm415_vm1, %v416_v2, 0  ;;  %v80_v8 = vld [vmem:[%s4042_s0 + $0x208] sm:$0xff]  ;;  %v18_v10 = vld [vmem:[%s4042_s0 + $0x18] sm:$0xff]  ;;  %vm2119_vm4 = vcmask 1041409   ;;  %vm2121_vm5 = vcmask 1042434  }
   0x3   :  { %v79_v5 = vld [vmem:[%s4042_s0 + $0x200] sm:$0xff]  ;;  %v143_v7 = vpack.c.bf16 %v16_v4, %v15_v3  ;;  %v419_v11 = vand.u32 %v2538_v0, %v417_v6  ;;  %v81_v13 = vld [vmem:[%s4042_s0 + $0x210] sm:$0xff]  ;;  %v82_v14 = vld [vmem:[%s4042_s0 + $0x218] sm:$0xff]  ;;  %v144_v19 = vpack.c.bf16 %v18_v10, %v17_v9  ;;  %vm2123_vm6 = vcmask 1043459  }
   0x4   :  { %v175_v12 = vpack.c.bf16 %v80_v8, %v79_v5  ;;  %v19_v15 = vld [vmem:[%s4042_s0 + $0x20] sm:$0xff]  ;;  %v20_v16 = vld [vmem:[%s4042_s0 + $0x28] sm:$0xff]  ;;  %v176_v20 = vpack.c.bf16 %v82_v14, %v81_v13  ;;  %v21_v23 = vld [vmem:[%s4042_s0 + $0x30] sm:$0xff]  ;;  %vm2125_vm7 = vcmask 1044484   ;;  %vm2127_vm8 = vcmask 1045509  }
   0x5   :  { %2407 = vmatprep.mubr.msk.bf16.mxu0 %vm221_vm2, %v143_v7  ;;  %v83_v17 = vld [vmem:[%s4042_s0 + $0x220] sm:$0xff]  ;;  %v84_v18 = vld [vmem:[%s4042_s0 + $0x228] sm:$0xff]  ;;  %2405 = vmatprep.subr.bf16.mxu0 %v419_v11  ;;  %v145_v21 = vpack.c.bf16 %v20_v16, %v19_v15  ;;  %v22_v24 = vld [vmem:[%s4042_s0 + $0x38] sm:$0xff]  ;;  %vm2129_vm9 = vcmask 1046534   ;;  %vm2131_vm10 = vcmask 1047559  }
   0x6   :  { %2535 = vmatprep.subr.bf16.mxu1 %v419_v11  ;;  %2406 = vmatpush3.bf16.msra.mxu0 %v419_v11  ;;  %v177_v22 = vpack.c.bf16 %v84_v18, %v83_v17  ;;  %v85_v25 = vld [vmem:[%s4042_s0 + $0x230] sm:$0xff]  ;;  %v86_v26 = vld [vmem:[%s4042_s0 + $0x238] sm:$0xff]  ;;  %v23_v27 = vld [vmem:[%s4042_s0 + $0x40] sm:$0xff]  ;;  %v146_v31 = vpack.c.bf16 %v22_v24, %v21_v23 }
   0x7   :  { %2536 = vmatpush3.bf16.msra.mxu1 %v419_v11  ;;  %2471 = vmatprep.mubr.msk.bf16.mxu1 %vm221_vm2, %v175_v12  ;;  %v24_v28 = vld [vmem:[%s4042_s0 + $0x48] sm:$0xff]  ;;  %v87_v29 = vld [vmem:[%s4042_s0 + $0x240] sm:$0xff]  ;;  %v178_v32 = vpack.c.bf16 %v86_v26, %v85_v25  ;;  %v25_v35 = vld [vmem:[%s4042_s0 + $0x50] sm:$0xff] }
   0x8   :  { %v88_v30 = vld [vmem:[%s4042_s0 + $0x248] sm:$0xff]  ;;  %v147_v33 = vpack.c.bf16 %v24_v28, %v23_v27  ;;  %v26_v36 = vld [vmem:[%s4042_s0 + $0x58] sm:$0xff]  ;;  %v89_v37 = vld [vmem:[%s4042_s0 + $0x250] sm:$0xff] }
   0x9   :  { %2408 = vmatmul.mubr.msk.bf16.vlgmr.msra.gmra.mrb[0].mxu0 %vm221_vm2, %v144_v19  ;;  %v179_v34 = vpack.c.bf16 %v88_v30, %v87_v29  ;;  %v90_v38 = vld [vmem:[%s4042_s0 + $0x258] sm:$0xff]  ;;  %v27_v39 = vld [vmem:[%s4042_s0 + $0x60] sm:$0xff]  ;;  %v28_v40 = vld [vmem:[%s4042_s0 + $0x68] sm:$0xff]  ;;  %v148_v43 = vpack.c.bf16 %v26_v36, %v25_v35 }
   0xa   :  { %2472 = vmatmul.mubr.msk.bf16.vlgmr.msra.gmra.mrb[0].mxu1 %vm221_vm2, %v176_v20  ;;  %2411 = vmatprep.mubr.msk.bf16.mxu0 %vm221_vm2, %v145_v21  ;;  %v91_v41 = vld [vmem:[%s4042_s0 + $0x260] sm:$0xff]  ;;  %v92_v42 = vld [vmem:[%s4042_s0 + $0x268] sm:$0xff]  ;;  %v180_v44 = vpack.c.bf16 %v90_v38, %v89_v37  ;;  %v149_v45 = vpack.c.bf16 %v28_v40, %v27_v39  ;;  %v29_v47 = vld [vmem:[%s4042_s0 + $0x70] sm:$0xff] }
   0xb   :  { %2475 = vmatprep.mubr.msk.bf16.mxu1 %vm221_vm2, %v177_v22  ;;  %v181_v46 = vpack.c.bf16 %v92_v42, %v91_v41  ;;  %v30_v48 = vld [vmem:[%s4042_s0 + $0x78] sm:$0xff]  ;;  %v93_v49 = vld [vmem:[%s4042_s0 + $0x270] sm:$0xff]  ;;  %v31_v51 = vld [vmem:[%s4042_s0 + $0x80] sm:$0xff] }
   0xc   :  { %v94_v50 = vld [vmem:[%s4042_s0 + $0x278] sm:$0xff]  ;;  %v32_v52 = vld [vmem:[%s4042_s0 + $0x88] sm:$0xff]  ;;  %v95_v53 = vld [vmem:[%s4042_s0 + $0x280] sm:$0xff]  ;;  %v150_v55 = vpack.c.bf16 %v30_v48, %v29_v47 }
   0xd   :  { %v96_v54 = vld [vmem:[%s4042_s0 + $0x288] sm:$0xff]  ;;  %v182_v56 = vpack.c.bf16 %v94_v50, %v93_v49  ;;  %v151_v57 = vpack.c.bf16 %v32_v52, %v31_v51  ;;  %v33_v59 = vld [vmem:[%s4042_s0 + $0x90] sm:$0xff]  ;;  %v34_v60 = vld [vmem:[%s4042_s0 + $0x98] sm:$0xff] }
   0xe   :  { %v183_v58 = vpack.c.bf16 %v96_v54, %v95_v53  ;;  %v97_v61 = vld [vmem:[%s4042_s0 + $0x290] sm:$0xff]  ;;  %v98_v62 = vld [vmem:[%s4042_s0 + $0x298] sm:$0xff]  ;;  %v35_v63 = vld [vmem:[%s4042_s0 + $0xa0] sm:$0xff]  ;;  %v152_v3 = vpack.c.bf16 %v34_v60, %v33_v59 }
   0xf   :  { %v36_v0 = vld [vmem:[%s4042_s0 + $0xa8] sm:$0xff]  ;;  %v99_v1 = vld [vmem:[%s4042_s0 + $0x2a0] sm:$0xff]  ;;  %v184_v4 = vpack.c.bf16 %v98_v62, %v97_v61  ;;  %v37_v7 = vld [vmem:[%s4042_s0 + $0xb0] sm:$0xff] }
  0x10   :  { %v100_v2 = vld [vmem:[%s4042_s0 + $0x2a8] sm:$0xff]  ;;  %v153_v5 = vpack.c.bf16 %v36_v0, %v35_v63  ;;  %v38_v8 = vld [vmem:[%s4042_s0 + $0xb8] sm:$0xff]  ;;  %v101_v9 = vld [vmem:[%s4042_s0 + $0x2b0] sm:$0xff] }
  0x11   :  { %2412 = vmatmul.mubr.msk.bf16.gmra.mrb[4].mxu0 %vm221_vm2, %v146_v31  ;;  %v185_v6 = vpack.c.bf16 %v100_v2, %v99_v1  ;;  %v102_v10 = vld [vmem:[%s4042_s0 + $0x2b8] sm:$0xff]  ;;  %v39_v11 = vld [vmem:[%s4042_s0 + $0xc0] sm:$0xff]  ;;  %v40_v12 = vld [vmem:[%s4042_s0 + $0xc8] sm:$0xff]  ;;  %v154_v15 = vpack.c.bf16 %v38_v8, %v37_v7 }
  0x12   :  { %2476 = vmatmul.mubr.msk.bf16.gmra.mrb[4].mxu1 %vm221_vm2, %v178_v32  ;;  %2415 = vmatprep.mubr.msk.bf16.mxu0 %vm221_vm2, %v147_v33  ;;  %v103_v13 = vld [vmem:[%s4042_s0 + $0x2c0] sm:$0xff]  ;;  %v104_v14 = vld [vmem:[%s4042_s0 + $0x2c8] sm:$0xff]  ;;  %v186_v16 = vpack.c.bf16 %v102_v10, %v101_v9  ;;  %v155_v17 = vpack.c.bf16 %v40_v12, %v39_v11  ;;  %v41_v19 = vld [vmem:[%s4042_s0 + $0xd0] sm:$0xff] }
  0x13   :  { %2479 = vmatprep.mubr.msk.bf16.mxu1 %vm221_vm2, %v179_v34  ;;  %v187_v18 = vpack.c.bf16 %v104_v14, %v103_v13  ;;  %v42_v20 = vld [vmem:[%s4042_s0 + $0xd8] sm:$0xff]  ;;  %v105_v21 = vld [vmem:[%s4042_s0 + $0x2d0] sm:$0xff]  ;;  %v43_v23 = vld [vmem:[%s4042_s0 + $0xe0] sm:$0xff] }
  0x14   :  { %v106_v22 = vld [vmem:[%s4042_s0 + $0x2d8] sm:$0xff]  ;;  %v44_v24 = vld [vmem:[%s4042_s0 + $0xe8] sm:$0xff]  ;;  %v107_v25 = vld [vmem:[%s4042_s0 + $0x2e0] sm:$0xff]  ;;  %v156_v27 = vpack.c.bf16 %v42_v20, %v41_v19 }
  0x15   :  { %v108_v26 = vld [vmem:[%s4042_s0 + $0x2e8] sm:$0xff]  ;;  %v188_v28 = vpack.c.bf16 %v106_v22, %v105_v21  ;;  %v157_v29 = vpack.c.bf16 %v44_v24, %v43_v23  ;;  %v45_v31 = vld [vmem:[%s4042_s0 + $0xf0] sm:$0xff]  ;;  %v46_v32 = vld [vmem:[%s4042_s0 + $0xf8] sm:$0xff] }
  0x16   :  { %v189_v30 = vpack.c.bf16 %v108_v26, %v107_v25  ;;  %v109_v33 = vld [vmem:[%s4042_s0 + $0x2f0] sm:$0xff]  ;;  %v110_v34 = vld [vmem:[%s4042_s0 + $0x2f8] sm:$0xff]  ;;  %v47_v35 = vld [vmem:[%s4042_s0 + $0x100] sm:$0xff]  ;;  %v158_v39 = vpack.c.bf16 %v46_v32, %v45_v31 }
  0x17   :  { %v48_v36 = vld [vmem:[%s4042_s0 + $0x108] sm:$0xff]  ;;  %v111_v37 = vld [vmem:[%s4042_s0 + $0x300] sm:$0xff]  ;;  %v190_v40 = vpack.c.bf16 %v110_v34, %v109_v33 }
  0x18   :  { %v112_v38 = vld [vmem:[%s4042_s0 + $0x308] sm:$0xff]  ;;  %v159_v41 = vpack.c.bf16 %v48_v36, %v47_v35  ;;  %v51_v47 = vld [vmem:[%s4042_s0 + $0x120] sm:$0xff] }
  0x19   :  { %2416 = vmatmul.mubr.msk.bf16.gmra.mrb[8].mxu0 %vm221_vm2, %v148_v43  ;;  %v191_v42 = vpack.c.bf16 %v112_v38, %v111_v37  ;;  %v49_v43 = vld [vmem:[%s4042_s0 + $0x110] sm:$0xff]  ;;  %v52_v48 = vld [vmem:[%s4042_s0 + $0x128] sm:$0xff]  ;;  %v115_v49 = vld [vmem:[%s4042_s0 + $0x320] sm:$0xff] }
  0x1a   :  { %2480 = vmatmul.mubr.msk.bf16.gmra.mrb[8].mxu1 %vm221_vm2, %v180_v44  ;;  %2419 = vmatprep.mubr.msk.bf16.mxu0 %vm221_vm2, %v149_v45  ;;  %v50_v44 = vld [vmem:[%s4042_s0 + $0x118] sm:$0xff]  ;;  %v113_v45 = vld [vmem:[%s4042_s0 + $0x310] sm:$0xff]  ;;  %v116_v50 = vld [vmem:[%s4042_s0 + $0x328] sm:$0xff]  ;;  %v161_v53 = vpack.c.bf16 %v52_v48, %v51_v47 }
  0x1b   :  { %2483 = vmatprep.mubr.msk.bf16.mxu1 %vm221_vm2, %v181_v46  ;;  %v114_v46 = vld [vmem:[%s4042_s0 + $0x318] sm:$0xff]  ;;  %v160_v51 = vpack.c.bf16 %v50_v44, %v49_v43  ;;  %v193_v54 = vpack.c.bf16 %v116_v50, %v115_v49  ;;  %v55_v59 = vld [vmem:[%s4042_s0 + $0x140] sm:$0xff]  ;;  %v56_v60 = vld [vmem:[%s4042_s0 + $0x148] sm:$0xff] }
  0x1c   :  { %v192_v52 = vpack.c.bf16 %v114_v46, %v113_v45  ;;  %v119_v61 = vld [vmem:[%s4042_s0 + $0x340] sm:$0xff]  ;;  %v120_v62 = vld [vmem:[%s4042_s0 + $0x348] sm:$0xff]  ;;  %v163_v1 = vpack.c.bf16 %v56_v60, %v55_v59 }
  0x1d   :  { %v195_v2 = vpack.c.bf16 %v120_v62, %v119_v61  ;;  %v59_v7 = vld [vmem:[%s4042_s0 + $0x160] sm:$0xff]  ;;  %v60_v8 = vld [vmem:[%s4042_s0 + $0x168] sm:$0xff] }
  0x1e   :  { %v123_v9 = vld [vmem:[%s4042_s0 + $0x360] sm:$0xff]  ;;  %v124_v10 = vld [vmem:[%s4042_s0 + $0x368] sm:$0xff]  ;;  %v165_v13 = vpack.c.bf16 %v60_v8, %v59_v7 }
  0x1f   :  { %v197_v14 = vpack.c.bf16 %v124_v10, %v123_v9  ;;  %v63_v19 = vld [vmem:[%s4042_s0 + $0x180] sm:$0xff]  ;;  %v64_v20 = vld [vmem:[%s4042_s0 + $0x188] sm:$0xff] }
  0x20   :  { %v127_v21 = vld [vmem:[%s4042_s0 + $0x380] sm:$0xff]  ;;  %v128_v22 = vld [vmem:[%s4042_s0 + $0x388] sm:$0xff]  ;;  %v167_v25 = vpack.c.bf16 %v64_v20, %v63_v19 }
  0x21   :  { %2420 = vmatmul.mubr.msk.bf16.gmra.mrb[12].mxu0 %vm221_vm2, %v150_v55  ;;  %v53_v55 = vld [vmem:[%s4042_s0 + $0x130] sm:$0xff]  ;;  %v199_v26 = vpack.c.bf16 %v128_v22, %v127_v21  ;;  %v67_v31 = vld [vmem:[%s4042_s0 + $0x1a0] sm:$0xff]  ;;  %v68_v32 = vld [vmem:[%s4042_s0 + $0x1a8] sm:$0xff] }
  0x22   :  { %2484 = vmatmul.mubr.msk.bf16.gmra.mrb[12].mxu1 %vm221_vm2, %v182_v56  ;;  %2423 = vmatprep.mubr.msk.bf16.mxu0 %vm221_vm2, %v151_v57  ;;  %v54_v56 = vld [vmem:[%s4042_s0 + $0x138] sm:$0xff]  ;;  %v117_v57 = vld [vmem:[%s4042_s0 + $0x330] sm:$0xff]  ;;  %v131_v33 = vld [vmem:[%s4042_s0 + $0x3a0] sm:$0xff]  ;;  %v169_v37 = vpack.c.bf16 %v68_v32, %v67_v31 }
  0x23   :  { %2487 = vmatprep.mubr.msk.bf16.mxu1 %vm221_vm2, %v183_v58  ;;  %v118_v58 = vld [vmem:[%s4042_s0 + $0x338] sm:$0xff]  ;;  %v162_v63 = vpack.c.bf16 %v54_v56, %v53_v55  ;;  %v132_v34 = vld [vmem:[%s4042_s0 + $0x3a8] sm:$0xff]  ;;  %v71_v43 = vld [vmem:[%s4042_s0 + $0x1c0] sm:$0xff] }
  0x24   :  { %v194_v0 = vpack.c.bf16 %v118_v58, %v117_v57  ;;  %v201_v38 = vpack.c.bf16 %v132_v34, %v131_v33  ;;  %v72_v44 = vld [vmem:[%s4042_s0 + $0x1c8] sm:$0xff]  ;;  %v135_v45 = vld [vmem:[%s4042_s0 + $0x3c0] sm:$0xff] }
  0x25   :  { %v136_v46 = vld [vmem:[%s4042_s0 + $0x3c8] sm:$0xff]  ;;  %v171_v49 = vpack.c.bf16 %v72_v44, %v71_v43  ;;  %v75_v55 = vld [vmem:[%s4042_s0 + $0x1e0] sm:$0xff] }
  0x26   :  { %v203_v50 = vpack.c.bf16 %v136_v46, %v135_v45  ;;  %v76_v56 = vld [vmem:[%s4042_s0 + $0x1e8] sm:$0xff]  ;;  %v139_v57 = vld [vmem:[%s4042_s0 + $0x3e0] sm:$0xff] }
  0x27   :  { %v140_v58 = vld [vmem:[%s4042_s0 + $0x3e8] sm:$0xff]  ;;  %v173_v61 = vpack.c.bf16 %v76_v56, %v75_v55 }
  0x28   :  { %v205_v62 = vpack.c.bf16 %v140_v58, %v139_v57 }
  0x29   :  { %2424 = vmatmul.mubr.msk.bf16.gmra.mrb[16].mxu0 %vm221_vm2, %v152_v3  ;;  %v57_v3 = vld [vmem:[%s4042_s0 + $0x150] sm:$0xff] }
  0x2a   :  { %2488 = vmatmul.mubr.msk.bf16.gmra.mrb[16].mxu1 %vm221_vm2, %v184_v4  ;;  %2427 = vmatprep.mubr.msk.bf16.mxu0 %vm221_vm2, %v153_v5  ;;  %v58_v4 = vld [vmem:[%s4042_s0 + $0x158] sm:$0xff]  ;;  %v121_v5 = vld [vmem:[%s4042_s0 + $0x350] sm:$0xff] }
  0x2b   :  { %2491 = vmatprep.mubr.msk.bf16.mxu1 %vm221_vm2, %v185_v6  ;;  %v122_v6 = vld [vmem:[%s4042_s0 + $0x358] sm:$0xff]  ;;  %v164_v11 = vpack.c.bf16 %v58_v4, %v57_v3 }
  0x2c   :  { %v196_v12 = vpack.c.bf16 %v122_v6, %v121_v5  ;;  %v3016_v5 = vld [vmem:[%s4043_s2] ss:$0 sm:$0xff] }
  0x31   :  { %2428 = vmatmul.mubr.msk.bf16.gmra.mrb[20].mxu0 %vm221_vm2, %v154_v15  ;;  %v61_v15 = vld [vmem:[%s4042_s0 + $0x170] sm:$0xff] }
  0x32   :  { %2492 = vmatmul.mubr.msk.bf16.gmra.mrb[20].mxu1 %vm221_vm2, %v186_v16  ;;  %2431 = vmatprep.mubr.msk.bf16.mxu0 %vm221_vm2, %v155_v17  ;;  %v62_v16 = vld [vmem:[%s4042_s0 + $0x178] sm:$0xff]  ;;  %v125_v17 = vld [vmem:[%s4042_s0 + $0x370] sm:$0xff] }
  0x33   :  { %2495 = vmatprep.mubr.msk.bf16.mxu1 %vm221_vm2, %v187_v18  ;;  %v126_v18 = vld [vmem:[%s4042_s0 + $0x378] sm:$0xff]  ;;  %v166_v23 = vpack.c.bf16 %v62_v16, %v61_v15 }
  0x34   :  { %v198_v24 = vpack.c.bf16 %v126_v18, %v125_v17 }
  0x39   :  { %2432 = vmatmul.mubr.msk.bf16.gmra.mrb[24].mxu0 %vm221_vm2, %v156_v27  ;;  %v65_v27 = vld [vmem:[%s4042_s0 + $0x190] sm:$0xff] }
  0x3a   :  { %2496 = vmatmul.mubr.msk.bf16.gmra.mrb[24].mxu1 %vm221_vm2, %v188_v28  ;;  %2435 = vmatprep.mubr.msk.bf16.mxu0 %vm221_vm2, %v157_v29  ;;  %v66_v28 = vld [vmem:[%s4042_s0 + $0x198] sm:$0xff]  ;;  %v129_v29 = vld [vmem:[%s4042_s0 + $0x390] sm:$0xff] }
  0x3b   :  { %2499 = vmatprep.mubr.msk.bf16.mxu1 %vm221_vm2, %v189_v30  ;;  %v130_v30 = vld [vmem:[%s4042_s0 + $0x398] sm:$0xff]  ;;  %v168_v35 = vpack.c.bf16 %v66_v28, %v65_v27 }
  0x3c   :  { %v200_v36 = vpack.c.bf16 %v130_v30, %v129_v29 }
  0x41   :  { %2436 = vmatmul.mubr.msk.bf16.gmra.mrb[28].mxu0 %vm221_vm2, %v158_v39  ;;  %v69_v39 = vld [vmem:[%s4042_s0 + $0x1b0] sm:$0xff] }
  0x42   :  { %2500 = vmatmul.mubr.msk.bf16.gmra.mrb[28].mxu1 %vm221_vm2, %v190_v40  ;;  %2439 = vmatprep.mubr.msk.bf16.mxu0 %vm221_vm2, %v159_v41  ;;  %v70_v40 = vld [vmem:[%s4042_s0 + $0x1b8] sm:$0xff]  ;;  %v133_v41 = vld [vmem:[%s4042_s0 + $0x3b0] sm:$0xff] }
  0x43   :  { %2503 = vmatprep.mubr.msk.bf16.mxu1 %vm221_vm2, %v191_v42  ;;  %v134_v42 = vld [vmem:[%s4042_s0 + $0x3b8] sm:$0xff]  ;;  %v170_v47 = vpack.c.bf16 %v70_v40, %v69_v39 }
  0x44   :  { %v202_v48 = vpack.c.bf16 %v134_v42, %v133_v41 }
  0x49   :  { %2440 = vmatmul.mubr.msk.bf16.gmra.mrb[32].mxu0 %vm221_vm2, %v160_v51  ;;  %v73_v51 = vld [vmem:[%s4042_s0 + $0x1d0] sm:$0xff] }
  0x4a   :  { %2504 = vmatmul.mubr.msk.bf16.gmra.mrb[32].mxu1 %vm221_vm2, %v192_v52  ;;  %2443 = vmatprep.mubr.msk.bf16.mxu0 %vm221_vm2, %v161_v53  ;;  %v74_v52 = vld [vmem:[%s4042_s0 + $0x1d8] sm:$0xff]  ;;  %v137_v53 = vld [vmem:[%s4042_s0 + $0x3d0] sm:$0xff] }
  0x4b   :  { %2507 = vmatprep.mubr.msk.bf16.mxu1 %vm221_vm2, %v193_v54  ;;  %v138_v54 = vld [vmem:[%s4042_s0 + $0x3d8] sm:$0xff]  ;;  %v172_v59 = vpack.c.bf16 %v74_v52, %v73_v51 }
  0x4c   :  { %v204_v60 = vpack.c.bf16 %v138_v54, %v137_v53 }
  0x51   :  { %2444 = vmatmul.mubr.msk.bf16.gmra.mrb[36].mxu0 %vm221_vm2, %v162_v63  ;;  %v77_v63 = vld [vmem:[%s4042_s0 + $0x1f0] sm:$0xff] }
  0x52   :  { %2508 = vmatmul.mubr.msk.bf16.gmra.mrb[36].mxu1 %vm221_vm2, %v194_v0  ;;  %2447 = vmatprep.mubr.msk.bf16.mxu0 %vm221_vm2, %v163_v1  ;;  %v78_v0 = vld [vmem:[%s4042_s0 + $0x1f8] sm:$0xff]  ;;  %v141_v1 = vld [vmem:[%s4042_s0 + $0x3f0] sm:$0xff] }
  0x53   :  { %2511 = vmatprep.mubr.msk.bf16.mxu1 %vm221_vm2, %v195_v2  ;;  %v142_v2 = vld [vmem:[%s4042_s0 + $0x3f8] sm:$0xff]  ;;  %v174_v3 = vpack.c.bf16 %v78_v0, %v77_v63 }
  0x54   :  { %v206_v4 = vpack.c.bf16 %v142_v2, %v141_v1 }
  0x59   :  { %2448 = vmatmul.mubr.msk.bf16.gmra.mrb[40].mxu0 %vm221_vm2, %v164_v11 }
  0x5a   :  { %2512 = vmatmul.mubr.msk.bf16.gmra.mrb[40].mxu1 %vm221_vm2, %v196_v12  ;;  %2451 = vmatprep.mubr.msk.bf16.mxu0 %vm221_vm2, %v165_v13 }
  0x5b   :  { %2515 = vmatprep.mubr.msk.bf16.mxu1 %vm221_vm2, %v197_v14 }
  0x61   :  { %2452 = vmatmul.mubr.msk.bf16.gmra.mrb[44].mxu0 %vm221_vm2, %v166_v23 }
  0x62   :  { %2516 = vmatmul.mubr.msk.bf16.gmra.mrb[44].mxu1 %vm221_vm2, %v198_v24  ;;  %2455 = vmatprep.mubr.msk.bf16.mxu0 %vm221_vm2, %v167_v25 }
  0x63   :  { %2519 = vmatprep.mubr.msk.bf16.mxu1 %vm221_vm2, %v199_v26 }
  0x69   :  { %2456 = vmatmul.mubr.msk.bf16.gmra.mrb[48].mxu0 %vm221_vm2, %v168_v35 }
  0x6a   :  { %2520 = vmatmul.mubr.msk.bf16.gmra.mrb[48].mxu1 %vm221_vm2, %v200_v36  ;;  %2459 = vmatprep.mubr.msk.bf16.mxu0 %vm221_vm2, %v169_v37 }
  0x6b   :  { %2523 = vmatprep.mubr.msk.bf16.mxu1 %vm221_vm2, %v201_v38 }
  0x71   :  { %2460 = vmatmul.mubr.msk.bf16.gmra.mrb[52].mxu0 %vm221_vm2, %v170_v47 }
  0x72   :  { %2524 = vmatmul.mubr.msk.bf16.gmra.mrb[52].mxu1 %vm221_vm2, %v202_v48  ;;  %2463 = vmatprep.mubr.msk.bf16.mxu0 %vm221_vm2, %v171_v49 }
  0x73   :  { %2527 = vmatprep.mubr.msk.bf16.mxu1 %vm221_vm2, %v203_v50 }
  0x79   :  { %2464 = vmatmul.mubr.msk.bf16.gmra.mrb[56].mxu0 %vm221_vm2, %v172_v59 }
  0x7a   :  { %2528 = vmatmul.mubr.msk.bf16.gmra.mrb[56].mxu1 %vm221_vm2, %v204_v60  ;;  %2467 = vmatprep.mubr.msk.bf16.mxu0 %vm221_vm2, %v173_v61 }
  0x7b   :  { %2531 = vmatprep.mubr.msk.bf16.mxu1 %vm221_vm2, %v205_v62 }
  0x81   :  { %2468 = vmatmul.mubr.msk.bf16.gmra.mrb[60].mxu0 %vm221_vm2, %v174_v3 }
  0x82   :  { %2532 = vmatmul.mubr.msk.bf16.gmra.mrb[60].mxu1 %vm221_vm2, %v206_v4 }
  0xdc   :  { %v2409_v6 = vpop.f32.mrb[0].mxu0 }
  0xdd   :  { %v2473_v7 = vpop.f32.mrb[0].mxu1  ;;  %v464_v8 = vadd.f32 %v2409_v6, %v3016_v5  ;;  %v455_v10 = vpop.f32.mrb[1].mxu0 }
  0xde   :  { %v720_v9 = vadd.f32 %v2473_v7, %v3016_v5  ;;  %v711_v11 = vpop.f32.mrb[1].mxu1  ;;  %v456_v12 = vadd.f32 %v3016_v5, %v455_v10  ;;  %v2410_v14 = vpop.f32.mrb[2].mxu0 }
  0xdf   :  { %v712_v13 = vadd.f32 %v3016_v5, %v711_v11  ;;  %v2474_v15 = vpop.f32.mrb[2].mxu1  ;;  %v981_v16 = vsel %vm966_vm3, %v464_v8, -inf  ;;  %v467_v18 = vadd.f32 %v2410_v14, %v3016_v5  ;;  %v458_v20 = vpop.f32.mrb[3].mxu0 }
  0xe0   :  { %v1429_v17 = vsel %vm966_vm3, %v720_v9, -inf  ;;  %v723_v19 = vadd.f32 %v2474_v15, %v3016_v5  ;;  %v714_v21 = vpop.f32.mrb[3].mxu1  ;;  %v982_v22 = vrot.slane %v981_v16, 4  ;;  %v967_v24 = vsel %vm966_vm3, %v456_v12, -inf }
  0xe1   :  { %v1430_v23 = vrot.slane %v1429_v17, 4  ;;  %v1415_v25 = vsel %vm966_vm3, %v712_v13, -inf  ;;  %v968_v26 = vrot.slane %v967_v24, 4  ;;  %v988_v28 = vsel %vm966_vm3, %v467_v18, -inf }
  0xe2   :  { %v1416_v27 = vrot.slane %v1415_v25, 4  ;;  %v1436_v29 = vsel %vm966_vm3, %v723_v19, -inf  ;;  %v983_v30 = vmax.f32 %v981_v16, %v982_v22  ;;  %v989_v32 = vrot.slane %v988_v28, 4 }
  0xe3   :  { %v1431_v31 = vmax.f32 %v1429_v17, %v1430_v23  ;;  %v1437_v33 = vrot.slane %v1436_v29, 4  ;;  %v969_v34 = vmax.f32 %v967_v24, %v968_v26  ;;  %v459_v36 = vadd.f32 %v3016_v5, %v458_v20 }
  0xe4   :  { %v1417_v35 = vmax.f32 %v1415_v25, %v1416_v27  ;;  %v715_v37 = vadd.f32 %v3016_v5, %v714_v21  ;;  %v984_v38 = vrot.slane %v983_v30, 2  ;;  %v990_v40 = vmax.f32 %v988_v28, %v989_v32  ;;  %v2413_v42 = vpop.f32.mrb[4].mxu0 }
  0xe5   :  { %v1432_v39 = vrot.slane %v1431_v31, 2  ;;  %v1438_v41 = vmax.f32 %v1436_v29, %v1437_v33  ;;  %v2477_v43 = vpop.f32.mrb[4].mxu1  ;;  %v970_v44 = vrot.slane %v969_v34, 2  ;;  %v974_v46 = vsel %vm966_vm3, %v459_v36, -inf  ;;  %v471_v48 = vpop.f32.mrb[5].mxu0 }
  0xe6   :  { %v1418_v45 = vrot.slane %v1417_v35, 2  ;;  %v1422_v47 = vsel %vm966_vm3, %v715_v37, -inf  ;;  %v727_v49 = vpop.f32.mrb[5].mxu1  ;;  %v985_v50 = vmax.f32 %v983_v30, %v984_v38  ;;  %v991_v52 = vrot.slane %v990_v40, 2  ;;  %v2414_v54 = vpop.f32.mrb[6].mxu0 }
  0xe7   :  { %v1433_v51 = vmax.f32 %v1431_v31, %v1432_v39  ;;  %v1439_v53 = vrot.slane %v1438_v41, 2  ;;  %v2478_v55 = vpop.f32.mrb[6].mxu1  ;;  %v971_v56 = vmax.f32 %v969_v34, %v970_v44  ;;  %v975_v58 = vrot.slane %v974_v46, 4  ;;  %v3034_v60 = vpop.f32.mrb[7].mxu0 }
  0xe8   :  { %v1419_v57 = vmax.f32 %v1417_v35, %v1418_v45  ;;  %v1423_v59 = vrot.slane %v1422_v47, 4  ;;  %v3036_v61 = vpop.f32.mrb[7].mxu1  ;;  %v986_v62 = vrot.slane %v985_v50, 1  ;;  %v992_v0 = vmax.f32 %v990_v40, %v991_v52 }
  0xe9   :  { %v1434_v63 = vrot.slane %v1433_v51, 1  ;;  %v1440_v1 = vmax.f32 %v1438_v41, %v1439_v53  ;;  %v972_v2 = vrot.slane %v971_v56, 1  ;;  %v976_v4 = vmax.f32 %v974_v46, %v975_v58 }
  0xea   :  { %v1420_v3 = vrot.slane %v1419_v57, 1  ;;  %v1424_v6 = vmax.f32 %v1422_v47, %v1423_v59  ;;  %v3038_v7 = vmax.f32 %v985_v50, %v986_v62  ;;  %v993_v9 = vrot.slane %v992_v0, 1 }
  0xeb   :  { %v3040_v8 = vmax.f32 %v1433_v51, %v1434_v63  ;;  %v1441_v10 = vrot.slane %v1440_v1, 1  ;;  %v973_v11 = vmax.f32 %v971_v56, %v972_v2  ;;  %v977_v13 = vrot.slane %v976_v4, 2 }
  0xec   :  { %v1421_v12 = vmax.f32 %v1419_v57, %v1420_v3  ;;  %v1425_v14 = vrot.slane %v1424_v6, 2  ;;  %v1865_v15 = vmax.f32 %v3038_v7, 0.0  ;;  %v994_v17 = vmax.f32 %v992_v0, %v993_v9  ;;  %v3044_v19 = vpop.f32.mrb[8].mxu0 }
  0xed   :  { %v1929_v16 = vmax.f32 %v3040_v8, 0.0  ;;  %v1442_v18 = vmax.f32 %v1440_v1, %v1441_v10  ;;  %v3046_v20 = vpop.f32.mrb[8].mxu1  ;;  %v1863_v21 = vmax.f32 %v973_v11, 0.0  ;;  %v978_v23 = vmax.f32 %v976_v4, %v977_v13  ;;  %v3048_v25 = vpop.f32.mrb[9].mxu0 }
  0xee   :  { %v1927_v22 = vmax.f32 %v1421_v12, 0.0  ;;  %v1426_v24 = vmax.f32 %v1424_v6, %v1425_v14  ;;  %v3050_v26 = vpop.f32.mrb[9].mxu1  ;;  %v1866_v27 = vmax.f32 %v994_v17, 0.0  ;;  %v480_v29 = vadd.f32 %v2413_v42, %v3016_v5  ;;  %v3054_v31 = vpop.f32.mrb[10].mxu0 }
  0xef   :  { %v1930_v28 = vmax.f32 %v1442_v18, 0.0  ;;  %v736_v30 = vadd.f32 %v2477_v43, %v3016_v5  ;;  %v3056_v32 = vpop.f32.mrb[10].mxu1  ;;  %v979_v33 = vrot.slane %v978_v23, 1  ;;  %v472_v35 = vadd.f32 %v3016_v5, %v471_v48  ;;  %v3060_v37 = vpop.f32.mrb[11].mxu0 }
  0xf0   :  { %v1427_v34 = vrot.slane %v1426_v24, 1  ;;  %v728_v36 = vadd.f32 %v3016_v5, %v727_v49  ;;  %v3062_v38 = vpop.f32.mrb[11].mxu1  ;;  %v1009_v39 = vsel %vm966_vm3, %v480_v29, -inf  ;;  %v483_v41 = vadd.f32 %v2414_v54, %v3016_v5 }
  0xf1   :  { %v1457_v40 = vsel %vm966_vm3, %v736_v30, -inf  ;;  %v739_v42 = vadd.f32 %v2478_v55, %v3016_v5  ;;  %v980_v43 = vmax.f32 %v978_v23, %v979_v33  ;;  %v1010_v45 = vrot.slane %v1009_v39, 4 }
  0xf2   :  { %v1428_v44 = vmax.f32 %v1426_v24, %v1427_v34  ;;  %v1458_v46 = vrot.slane %v1457_v40, 4  ;;  %v995_v47 = vsel %vm966_vm3, %v472_v35, -inf  ;;  %v1443_v48 = vsel %vm966_vm3, %v728_v36, -inf }
  0xf3   :  { %v1016_v49 = vsel %vm966_vm3, %v483_v41, -inf  ;;  %v1464_v50 = vsel %vm966_vm3, %v739_v42, -inf  ;;  %v1864_v51 = vmax.f32 %v980_v43, 0.0  ;;  %v1011_v53 = vmax.f32 %v1009_v39, %v1010_v45 }
  0xf4   :  { %v1928_v52 = vmax.f32 %v1428_v44, 0.0  ;;  %v1459_v56 = vmax.f32 %v1457_v40, %v1458_v46  ;;  %v996_v57 = vrot.slane %v995_v47, 4  ;;  %v1444_v54 = vrot.slane %v1443_v48, 4  ;;  %v3072_v59 = vpop.f32.mrb[12].mxu0 }
  0xf5   :  { %v1017_v58 = vrot.slane %v1016_v49, 4  ;;  %v1465_v55 = vrot.slane %v1464_v50, 4  ;;  %v3074_v62 = vpop.f32.mrb[12].mxu1  ;;  %v2120_v63 = vsel %vm2119_vm4, %v1864_v51, %v1863_v21  ;;  %v1012_v1 = vrot.slane %v1011_v53, 2  ;;  %v3078_v3 = vpop.f32.mrb[13].mxu0 }
  0xf6   :  { %v2182_v0 = vsel %vm2119_vm4, %v1928_v52, %v1927_v22  ;;  %v1460_v2 = vrot.slane %v1459_v56, 2  ;;  %v3080_v4 = vpop.f32.mrb[13].mxu1  ;;  %v2122_v6 = vsel %vm2121_vm5, %v1865_v15, %v2120_v63  ;;  %v997_v8 = vmax.f32 %v995_v47, %v996_v57  ;;  %v3084_v10 = vpop.f32.mrb[14].mxu0 }
  0xf7   :  { %v2183_v7 = vsel %vm2121_vm5, %v1929_v16, %v2182_v0  ;;  %v1445_v9 = vmax.f32 %v1443_v48, %v1444_v54  ;;  %v3086_v11 = vpop.f32.mrb[14].mxu1  ;;  %v1013_v12 = vmax.f32 %v1011_v53, %v1012_v1  ;;  %v2124_v14 = vsel %vm2123_vm6, %v1866_v27, %v2122_v6  ;;  %v3090_v18 = vpop.f32.mrb[15].mxu0 }
  0xf8   :  { %v1461_v13 = vmax.f32 %v1459_v56, %v1460_v2  ;;  %v2184_v17 = vsel %vm2123_vm6, %v1930_v28, %v2183_v7  ;;  %v3092_v21 = vpop.f32.mrb[15].mxu1  ;;  %v998_v15 = vrot.slane %v997_v8, 2  ;;  %v1018_v16 = vmax.f32 %v1016_v49, %v1017_v58 }
  0xf9   :  { %v1446_v22 = vrot.slane %v1445_v9, 2  ;;  %v1466_v23 = vmax.f32 %v1464_v50, %v1465_v55  ;;  %v1014_v24 = vrot.slane %v1013_v12, 1  ;;  %v475_v30 = vadd.f32 %v3016_v5, %v3034_v60 }
  0xfa   :  { %v1462_v29 = vrot.slane %v1461_v13, 1  ;;  %v731_v33 = vadd.f32 %v3016_v5, %v3036_v61  ;;  %v999_v27 = vmax.f32 %v997_v8, %v998_v15  ;;  %v1019_v35 = vrot.slane %v1018_v16, 2 }
  0xfb   :  { %v1447_v34 = vmax.f32 %v1445_v9, %v1446_v22  ;;  %v1467_v28 = vrot.slane %v1466_v23, 2  ;;  %v3098_v36 = vmax.f32 %v1013_v12, %v1014_v24  ;;  %v1002_v40 = vsel %vm966_vm3, %v475_v30, -inf }
  0xfc   :  { %v3100_v39 = vmax.f32 %v1461_v13, %v1462_v29  ;;  %v1450_v41 = vsel %vm966_vm3, %v731_v33, -inf  ;;  %v1000_v42 = vrot.slane %v999_v27, 1  ;;  %v1020_v44 = vmax.f32 %v1018_v16, %v1019_v35  ;;  %v3104_v60 = vpop.f32.mrb[16].mxu0 }
  0xfd   :  { %v1448_v43 = vrot.slane %v1447_v34, 1  ;;  %v1468_v45 = vmax.f32 %v1466_v23, %v1467_v28  ;;  %v3106_v46 = vpop.f32.mrb[16].mxu1  ;;  %v1869_v61 = vmax.f32 %v3098_v36, 0.0  ;;  %v1003_v48 = vrot.slane %v1002_v40, 4  ;;  %v3110_v50 = vpop.f32.mrb[17].mxu0 }
  0xfe   :  { %v1933_v47 = vmax.f32 %v3100_v39, 0.0  ;;  %v1451_v49 = vrot.slane %v1450_v41, 4  ;;  %v3112_v51 = vpop.f32.mrb[17].mxu1  ;;  %v1001_v52 = vmax.f32 %v999_v27, %v1000_v42  ;;  %v1021_v56 = vrot.slane %v1020_v44, 1  ;;  %v3114_v54 = vpop.f32.mrb[18].mxu0 }
  0xff   :  { %v1449_v53 = vmax.f32 %v1447_v34, %v1448_v43  ;;  %v1469_v57 = vrot.slane %v1468_v45, 1  ;;  %v3116_v58 = vpop.f32.mrb[18].mxu1  ;;  %v1004_v55 = vmax.f32 %v1002_v40, %v1003_v48  ;;  %v496_v0 = vadd.f32 %v3044_v19, %v3016_v5  ;;  %v3122_v2 = vpop.f32.mrb[19].mxu0 }
 0x100   :  { %v1452_v63 = vmax.f32 %v1450_v41, %v1451_v49  ;;  %v752_v1 = vadd.f32 %v3046_v20, %v3016_v5  ;;  %v3124_v6 = vpop.f32.mrb[19].mxu1  ;;  %v1867_v7 = vmax.f32 %v1001_v52, 0.0  ;;  %v3126_v9 = vmax.f32 %v1020_v44, %v1021_v56 }
 0x101   :  { %v1931_v8 = vmax.f32 %v1449_v53, 0.0  ;;  %v3128_v12 = vmax.f32 %v1468_v45, %v1469_v57  ;;  %v1005_v13 = vrot.slane %v1004_v55, 2  ;;  %v1037_v22 = vsel %vm966_vm3, %v496_v0, -inf }
 0x102   :  { %v1453_v15 = vrot.slane %v1452_v63, 2  ;;  %v1485_v19 = vsel %vm966_vm3, %v752_v1, -inf  ;;  %v2126_v20 = vsel %vm2125_vm7, %v1867_v7, %v2124_v14  ;;  %v1870_v23 = vmax.f32 %v3126_v9, 0.0 }
 0x103   :  { %v2185_v16 = vsel %vm2125_vm7, %v1931_v8, %v2184_v17  ;;  %v1934_v24 = vmax.f32 %v3128_v12, 0.0  ;;  %v1006_v29 = vmax.f32 %v1004_v55, %v1005_v13  ;;  %v1038_v33 = vrot.slane %v1037_v22, 4 }
 0x104   :  { %v1454_v30 = vmax.f32 %v1452_v63, %v1453_v15  ;;  %v1486_v27 = vrot.slane %v1485_v19, 4  ;;  %v488_v34 = vadd.f32 %v3016_v5, %v3048_v25  ;;  %v744_v35 = vadd.f32 %v3016_v5, %v3050_v26  ;;  %v3144_v28 = vpop.f32.mrb[20].mxu0 }
 0x105   :  { %v499_v14 = vadd.f32 %v3054_v31, %v3016_v5  ;;  %v755_v17 = vadd.f32 %v3056_v32, %v3016_v5  ;;  %v3146_v40 = vpop.f32.mrb[20].mxu1  ;;  %v1007_v41 = vrot.slane %v1006_v29, 1  ;;  %v1039_v43 = vmax.f32 %v1037_v22, %v1038_v33  ;;  %v3148_v45 = vpop.f32.mrb[21].mxu0 }
 0x106   :  { %v1455_v42 = vrot.slane %v1454_v30, 1  ;;  %v1487_v44 = vmax.f32 %v1485_v19, %v1486_v27  ;;  %v3150_v25 = vpop.f32.mrb[21].mxu1  ;;  %v1023_v26 = vsel %vm966_vm3, %v488_v34, -inf  ;;  %v1471_v48 = vsel %vm966_vm3, %v744_v35, -inf  ;;  %v3156_v49 = vpop.f32.mrb[22].mxu0 }
 0x107   :  { %v1044_v31 = vsel %vm966_vm3, %v499_v14, -inf  ;;  %v1492_v32 = vsel %vm966_vm3, %v755_v17, -inf  ;;  %v3158_v52 = vpop.f32.mrb[22].mxu1  ;;  %v1008_v53 = vmax.f32 %v1006_v29, %v1007_v41  ;;  %v1040_v57 = vrot.slane %v1039_v43, 2  ;;  %v3160_v63 = vpop.f32.mrb[23].mxu0 }
 0x108   :  { %v1456_v56 = vmax.f32 %v1454_v30, %v1455_v42  ;;  %v1488_v55 = vrot.slane %v1487_v44, 2  ;;  %v3162_v0 = vpop.f32.mrb[23].mxu1  ;;  %v1024_v1 = vrot.slane %v1023_v26, 4  ;;  %v1472_v7 = vrot.slane %v1471_v48, 4 }
 0x109   :  { %v1045_v8 = vrot.slane %v1044_v31, 4  ;;  %v1493_v9 = vrot.slane %v1492_v32, 4  ;;  %v1868_v12 = vmax.f32 %v1008_v53, 0.0  ;;  %v1041_v15 = vmax.f32 %v1039_v43, %v1040_v57 }
 0x10a   :  { %v1932_v13 = vmax.f32 %v1456_v56, 0.0  ;;  %v1489_v22 = vmax.f32 %v1487_v44, %v1488_v55  ;;  %v1025_v19 = vmax.f32 %v1023_v26, %v1024_v1  ;;  %v1473_v33 = vmax.f32 %v1471_v48, %v1472_v7 }
 0x10b   :  { %v1046_v27 = vmax.f32 %v1044_v31, %v1045_v8  ;;  %v1494_v34 = vmax.f32 %v1492_v32, %v1493_v9  ;;  %v2128_v29 = vsel %vm2127_vm8, %v1868_v12, %v2126_v20  ;;  %v1042_v35 = vrot.slane %v1041_v15, 1 }
 0x10c   :  { %v2186_v30 = vsel %vm2127_vm8, %v1932_v13, %v2185_v16  ;;  %v1490_v14 = vrot.slane %v1489_v22, 1  ;;  %v2130_v17 = vsel %vm2129_vm9, %v1869_v61, %v2128_v29  ;;  %v1026_v42 = vrot.slane %v1025_v19, 2  ;;  %v3172_v44 = vpop.f32.mrb[24].mxu0 }
 0x10d   :  { %v2187_v41 = vsel %vm2129_vm9, %v1933_v47, %v2186_v30  ;;  %v1474_v43 = vrot.slane %v1473_v33, 2  ;;  %v3174_v26 = vpop.f32.mrb[24].mxu1  ;;  %v2132_v20 = vsel %vm2131_vm10, %v1870_v23, %v2130_v17  ;;  %v3178_v48 = vmax.f32 %v1041_v15, %v1042_v35  ;;  %v3182_v36 = vpop.f32.mrb[25].mxu0 }
 0x10e   :  { %v2188_v16 = vsel %vm2131_vm10, %v1934_v24, %v2187_v41  ;;  %v3180_v31 = vmax.f32 %v1489_v22, %v1490_v14  ;;  %v3184_v61 = vpop.f32.mrb[25].mxu1  ;;  %2254 = vst.msk [vmem:[%s4044_s3] sm:$0xff] %vm966_vm3, %v2132_v20  ;;  %v1027_v39 = vmax.f32 %v1025_v19, %v1026_v42  ;;  %v1047_v23 = vrot.slane %v1046_v27, 2  ;;  %v3194_v32 = vpop.f32.mrb[26].mxu0 }
 0x10f   :  { %2262 = vst.msk [vmem:[%s4044_s3 + $0x40] sm:$0xff] %vm966_vm3, %v2188_v16  ;;  %v1475_v47 = vmax.f32 %v1473_v33, %v1474_v43  ;;  %v1495_v24 = vrot.slane %v1494_v34, 2  ;;  %v3196_v53 = vpop.f32.mrb[26].mxu1  ;;  %v491_v55 = vadd.f32 %v3016_v5, %v3060_v37  ;;  %v747_v1 = vadd.f32 %v3016_v5, %v3062_v38  ;;  %v3204_v7 = vpop.f32.mrb[27].mxu0 }
 0x110   :  { %v3206_v8 = vpop.f32.mrb[27].mxu1  ;;  %v1028_v9 = vrot.slane %v1027_v39, 1  ;;  %v1048_v13 = vmax.f32 %v1046_v27, %v1047_v23  ;;  %v512_v33 = vadd.f32 %v3072_v59, %v3016_v5  ;;  %v768_v37 = vadd.f32 %v3074_v62, %v3016_v5 }
 0x111   :  { %v1476_v12 = vrot.slane %v1475_v47, 1  ;;  %v1496_v15 = vmax.f32 %v1494_v34, %v1495_v24  ;;  %v1030_v22 = vsel %vm966_vm3, %v491_v55, -inf  ;;  %v1478_v19 = vsel %vm966_vm3, %v747_v1, -inf }
 0x112   :  { %v3214_v29 = vmax.f32 %v1027_v39, %v1028_v9  ;;  %v1049_v30 = vrot.slane %v1048_v13, 1  ;;  %v1031_v14 = vrot.slane %v1030_v22, 4  ;;  %v1479_v17 = vrot.slane %v1478_v19, 4 }
 0x113   :  { %v3216_v38 = vmax.f32 %v1475_v47, %v1476_v12  ;;  %v1497_v35 = vrot.slane %v1496_v15, 1  ;;  %v1065_v27 = vsel %vm966_vm3, %v512_v33, -inf  ;;  %v1513_v34 = vsel %vm966_vm3, %v768_v37, -inf }
 0x114   :  { %v3222_v59 = vmax.f32 %v1048_v13, %v1049_v30  ;;  %v3226_v62 = vpop.f32.mrb[28].mxu0  ;;  %v1032_v16 = vmax.f32 %v1030_v22, %v1031_v14  ;;  %v1480_v39 = vmax.f32 %v1478_v19, %v1479_v17  ;;  %v1066_v47 = vrot.slane %v1065_v27, 4 }
 0x115   :  { %v3224_v43 = vmax.f32 %v1496_v15, %v1497_v35  ;;  %v3228_v20 = vpop.f32.mrb[28].mxu1  ;;  %v1514_v23 = vrot.slane %v1513_v34, 4  ;;  %v3230_v24 = vpop.f32.mrb[29].mxu0  ;;  %v504_v12 = vadd.f32 %v3016_v5, %v3078_v3  ;;  %v760_v13 = vadd.f32 %v3016_v5, %v3080_v4 }
 0x116   :  { %4045 = vst [vmem:[#allocation2_spill] sm:$0xff] %v3228_v20  ;;  %4046 = vst [vmem:[#allocation3_spill] sm:$0xff] %v3230_v24  ;;  %v3232_v55 = vpop.f32.mrb[29].mxu1  ;;  %v3240_v15 = vpop.f32.mrb[30].mxu0  ;;  %v1033_v19 = vrot.slane %v1032_v16, 2  ;;  %v1481_v33 = vrot.slane %v1480_v39, 2  ;;  %v1067_v37 = vmax.f32 %v1065_v27, %v1066_v47  ;;  %v515_v3 = vadd.f32 %v3084_v10, %v3016_v5 }
 0x117   :  { %4047 = vst [vmem:[#allocation4_spill] sm:$0xff] %v3232_v55  ;;  %4048 = vst [vmem:[#allocation5_spill] sm:$0xff] %v3240_v15  ;;  %v3242_v22 = vpop.f32.mrb[30].mxu1  ;;  %v1515_v30 = vmax.f32 %v1513_v34, %v1514_v23  ;;  %v3244_v35 = vpop.f32.mrb[31].mxu0  ;;  %v1051_v17 = vsel %vm966_vm3, %v504_v12, -inf  ;;  %v1499_v9 = vsel %vm966_vm3, %v760_v13, -inf  ;;  %v771_v4 = vadd.f32 %v3086_v11, %v3016_v5 }
 0x118   :  { %4049 = vst [vmem:[#allocation6_spill] sm:$0xff] %v3242_v22  ;;  %4050 = vst [vmem:[#allocation7_spill] sm:$0xff] %v3244_v35  ;;  %v3246_v14 = vpop.f32.mrb[31].mxu1  ;;  %v1034_v1 = vmax.f32 %v1032_v16, %v1033_v19  ;;  %v1482_v57 = vmax.f32 %v1480_v39, %v1481_v33  ;;  %v1068_v56 = vrot.slane %v1067_v37, 2  ;;  %v1052_v27 = vrot.slane %v1051_v17, 4 }
 0x119   :  { %4051 = vst [vmem:[#allocation8_spill] sm:$0xff] %v3246_v14  ;;  %v1516_v42 = vrot.slane %v1515_v30, 2  ;;  %v1500_v34 = vrot.slane %v1499_v9, 4  ;;  %v1072_v47 = vsel %vm966_vm3, %v515_v3, -inf  ;;  %v1520_v23 = vsel %vm966_vm3, %v771_v4, -inf }
 0x11a   :  { %v1035_v41 = vrot.slane %v1034_v1, 1  ;;  %v1483_v12 = vrot.slane %v1482_v57, 1  ;;  %v1069_v14 = vmax.f32 %v1067_v37, %v1068_v56  ;;  %v1053_v35 = vmax.f32 %v1051_v17, %v1052_v27 }
 0x11b   :  { %v1517_v13 = vmax.f32 %v1515_v30, %v1516_v42  ;;  %v1501_v22 = vmax.f32 %v1499_v9, %v1500_v34  ;;  %v1073_v10 = vrot.slane %v1072_v47, 4  ;;  %v1521_v15 = vrot.slane %v1520_v23, 4 }
 0x11c   :  { %v3256_v55 = vpop.f32.mrb[32].mxu0  ;;  %v1036_v16 = vmax.f32 %v1034_v1, %v1035_v41  ;;  %v1484_v39 = vmax.f32 %v1482_v57, %v1483_v12  ;;  %v1070_v19 = vrot.slane %v1069_v14, 1  ;;  %v1054_v4 = vrot.slane %v1053_v35, 2 }
 0x11d   :  { %v3258_v11 = vpop.f32.mrb[32].mxu1  ;;  %v1518_v33 = vrot.slane %v1517_v13, 1  ;;  %v3260_v24 = vpop.f32.mrb[33].mxu0  ;;  %v1502_v20 = vrot.slane %v1501_v22, 2  ;;  %v1074_v56 = vmax.f32 %v1072_v47, %v1073_v10  ;;  %v1522_v42 = vmax.f32 %v1520_v23, %v1521_v15 }
 0x11e   :  { %4052 = vst [vmem:[#allocation9_spill] sm:$0xff] %v3260_v24  ;;  %v3262_v3 = vpop.f32.mrb[33].mxu1  ;;  %v3264_v37 = vpop.f32.mrb[34].mxu0  ;;  %v1872_v30 = vmax.f32 %v1036_v16, 0.0  ;;  %v1936_v17 = vmax.f32 %v1484_v39, 0.0  ;;  %v3268_v27 = vmax.f32 %v1069_v14, %v1070_v19  ;;  %v1055_v34 = vmax.f32 %v1053_v35, %v1054_v4 }
 0x11f   :  { %4053 = vst [vmem:[#allocation10_spill] sm:$0xff] %v3262_v3  ;;  %v3266_v9 = vpop.f32.mrb[34].mxu1  ;;  %v3270_v41 = vmax.f32 %v1517_v13, %v1518_v33  ;;  %v3272_v57 = vpop.f32.mrb[35].mxu0  ;;  %v1503_v12 = vmax.f32 %v1501_v22, %v1502_v20  ;;  %v1075_v3 = vrot.slane %v1074_v56, 2  ;;  %v1523_v24 = vrot.slane %v1522_v42, 2 }
 0x120   :  { %v3274_v1 = vpop.f32.mrb[35].mxu1  ;;  %v4054_v15 = vmax.f32 %v3214_v29, 0.0  ;;  %v4055_v23 = vmax.f32 %v3216_v38, 0.0  ;;  %v4056_v16 = vmax.f32 %v3178_v48, 0.0  ;;  %v4057_v20 = vmax.f32 %v3180_v31, 0.0 }
 0x121   :  { %v1056_v35 = vrot.slane %v1055_v34, 1  ;;  %v1504_v29 = vrot.slane %v1503_v12, 1  ;;  %v4058_v19 = vmax.f32 %v3222_v59, 0.0  ;;  %v4059_v33 = vmax.f32 %v3224_v43, 0.0 }
 0x122   :  { %v2133_v47 = vsel %vm2119_vm4, %v1872_v30, %v4054_v15  ;;  %v2189_v10 = vsel %vm2119_vm4, %v1936_v17, %v4055_v23  ;;  %v1076_v30 = vmax.f32 %v1074_v56, %v1075_v3  ;;  %v1524_v17 = vmax.f32 %v1522_v42, %v1523_v24 }
 0x123   :  { %v2134_v39 = vsel %vm2121_vm5, %v4056_v16, %v2133_v47  ;;  %v2190_v22 = vsel %vm2121_vm5, %v4057_v20, %v2189_v10  ;;  %v1057_v15 = vmax.f32 %v1055_v34, %v1056_v35  ;;  %v1505_v48 = vmax.f32 %v1503_v12, %v1504_v29 }
 0x124   :  { %v2135_v38 = vsel %vm2123_vm6, %v4058_v19, %v2134_v39  ;;  %v2191_v4 = vsel %vm2123_vm6, %v4059_v33, %v2190_v22  ;;  %v507_v47 = vadd.f32 %v3016_v5, %v3090_v18  ;;  %v763_v31 = vadd.f32 %v3016_v5, %v3092_v21  ;;  %v3300_v23 = vpop.f32.mrb[36].mxu0 }
 0x125   :  { %4060 = vst [vmem:[#allocation11_spill] sm:$0xff] %v3300_v23  ;;  %v3302_v10 = vpop.f32.mrb[36].mxu1  ;;  %v1077_v59 = vrot.slane %v1076_v30, 1  ;;  %v1525_v16 = vrot.slane %v1524_v17, 1  ;;  %v528_v43 = vadd.f32 %v3104_v60, %v3016_v5  ;;  %v784_v24 = vadd.f32 %v3106_v46, %v3016_v5  ;;  %v3308_v3 = vpop.f32.mrb[37].mxu0 }
 0x126   :  { %4061 = vst [vmem:[#allocation12_spill] sm:$0xff] %v3302_v10  ;;  %4062 = vst [vmem:[#allocation13_spill] sm:$0xff] %v3308_v3  ;;  %v3310_v56 = vpop.f32.mrb[37].mxu1  ;;  %v1875_v18 = vmax.f32 %v1057_v15, 0.0  ;;  %v1939_v42 = vmax.f32 %v1505_v48, 0.0  ;;  %v1058_v21 = vsel %vm966_vm3, %v507_v47, -inf  ;;  %v520_v13 = vadd.f32 %v3016_v5, %v3110_v50 }
 0x127   :  { %4063 = vst [vmem:[#allocation14_spill] sm:$0xff] %v3310_v56  ;;  %v1506_v34 = vsel %vm966_vm3, %v763_v31, -inf  ;;  %v3314_v12 = vpop.f32.mrb[38].mxu0  ;;  %v3316_v39 = vpop.f32.mrb[38].mxu1  ;;  %v3318_v20 = vmax.f32 %v1076_v30, %v1077_v59  ;;  %v3320_v60 = vmax.f32 %v1524_v17, %v1525_v16  ;;  %v1059_v22 = vrot.slane %v1058_v21, 4 }
 0x128   :  { %4064 = vst [vmem:[#allocation15_spill] sm:$0xff] %v3314_v12  ;;  %4065 = vst [vmem:[#allocation16_spill] sm:$0xff] %v3316_v39  ;;  %v1507_v46 = vrot.slane %v1506_v34, 4  ;;  %v3322_v35 = vpop.f32.mrb[39].mxu0  ;;  %v3324_v29 = vpop.f32.mrb[39].mxu1  ;;  %v3327_v19 = vsel %vm2125_vm7, %v1875_v18, %v2135_v38  ;;  %v3330_v33 = vsel %vm2125_vm7, %v1939_v42, %v2191_v4  ;;  %v1093_v15 = vsel %vm966_vm3, %v528_v43, -inf }
 0x129   :  { %4066 = vst [vmem:[#allocation17_spill] sm:$0xff] %v3322_v35  ;;  %4067 = vst [vmem:[#allocation18_spill] sm:$0xff] %v3324_v29  ;;  %v1541_v48 = vsel %vm966_vm3, %v784_v24, -inf  ;;  %v1060_v47 = vmax.f32 %v1058_v21, %v1059_v22  ;;  %v1094_v59 = vrot.slane %v1093_v15, 4  ;;  %v776_v38 = vadd.f32 %v3016_v5, %v3112_v51 }
 0x12a   :  { %v1508_v31 = vmax.f32 %v1506_v34, %v1507_v46  ;;  %v1542_v16 = vrot.slane %v1541_v48, 4  ;;  %v531_v43 = vadd.f32 %v3114_v54, %v3016_v5  ;;  %v787_v24 = vadd.f32 %v3116_v58, %v3016_v5 }
 0x12b   :  { %v1061_v4 = vrot.slane %v1060_v47, 2  ;;  %v1095_v42 = vmax.f32 %v1093_v15, %v1094_v59  ;;  %v1079_v21 = vsel %vm966_vm3, %v520_v13, -inf  ;;  %v1527_v34 = vsel %vm966_vm3, %v776_v38, -inf }
 0x12c   :  { %v1509_v18 = vrot.slane %v1508_v31, 2  ;;  %v1543_v17 = vmax.f32 %v1541_v48, %v1542_v16  ;;  %v3346_v22 = vpop.f32.mrb[40].mxu0  ;;  %v1080_v30 = vrot.slane %v1079_v21, 4  ;;  %v1528_v14 = vrot.slane %v1527_v34, 4 }
 0x12d   :  { %4068 = vst [vmem:[#allocation19_spill] sm:$0xff] %v3346_v22  ;;  %v3348_v50 = vpop.f32.mrb[40].mxu1  ;;  %v1062_v46 = vmax.f32 %v1060_v47, %v1061_v4  ;;  %v3350_v29 = vpop.f32.mrb[41].mxu0  ;;  %v1096_v35 = vrot.slane %v1095_v42, 2  ;;  %v1100_v15 = vsel %vm966_vm3, %v531_v43, -inf  ;;  %v1548_v13 = vsel %vm966_vm3, %v787_v24, -inf }
 0x12e   :  { %4069 = vst [vmem:[#allocation20_spill] sm:$0xff] %v3348_v50  ;;  %v1510_v51 = vmax.f32 %v1508_v31, %v1509_v18  ;;  %4070 = vst [vmem:[#allocation21_spill] sm:$0xff] %v3350_v29  ;;  %v3352_v54 = vpop.f32.mrb[41].mxu1  ;;  %v1544_v58 = vrot.slane %v1543_v17, 2  ;;  %v3356_v48 = vpop.f32.mrb[42].mxu0  ;;  %v1081_v47 = vmax.f32 %v1079_v21, %v1080_v30  ;;  %v1529_v31 = vmax.f32 %v1527_v34, %v1528_v14 }
 0x12f   :  { %4071 = vst [vmem:[#allocation22_spill] sm:$0xff] %v3352_v54  ;;  %4072 = vst [vmem:[#allocation23_spill] sm:$0xff] %v3356_v48  ;;  %v3358_v59 = vpop.f32.mrb[42].mxu1  ;;  %v1063_v16 = vrot.slane %v1062_v46, 1  ;;  %v3360_v4 = vpop.f32.mrb[43].mxu0  ;;  %v1097_v29 = vmax.f32 %v1095_v42, %v1096_v35  ;;  %v1101_v50 = vrot.slane %v1100_v15, 4 }
 0x130   :  { %4073 = vst [vmem:[#allocation24_spill] sm:$0xff] %v3358_v59  ;;  %v1511_v38 = vrot.slane %v1510_v51, 1  ;;  %v3362_v18 = vpop.f32.mrb[43].mxu1  ;;  %v1545_v54 = vmax.f32 %v1543_v17, %v1544_v58  ;;  %v1549_v22 = vrot.slane %v1548_v13, 4  ;;  %v1082_v12 = vrot.slane %v1081_v47, 2 }
 0x131   :  { %v1064_v39 = vmax.f32 %v1062_v46, %v1063_v16  ;;  %v1530_v24 = vrot.slane %v1529_v31, 2  ;;  %v1098_v56 = vrot.slane %v1097_v29, 1  ;;  %v1102_v3 = vmax.f32 %v1100_v15, %v1101_v50 }
 0x132   :  { %v1512_v43 = vmax.f32 %v1510_v51, %v1511_v38  ;;  %v1546_v48 = vrot.slane %v1545_v54, 1  ;;  %v1550_v59 = vmax.f32 %v1548_v13, %v1549_v22  ;;  %v1083_v30 = vmax.f32 %v1081_v47, %v1082_v12 }
 0x133   :  { %v1876_v10 = vmax.f32 %v1064_v39, 0.0  ;;  %v1531_v14 = vmax.f32 %v1529_v31, %v1530_v24  ;;  %v3364_v21 = vmax.f32 %v1097_v29, %v1098_v56  ;;  %v1103_v35 = vrot.slane %v1102_v3, 2 }
 0x134   :  { %v1940_v23 = vmax.f32 %v1512_v43, 0.0  ;;  %v3366_v34 = vmax.f32 %v1545_v54, %v1546_v48  ;;  %v1551_v17 = vrot.slane %v1550_v59, 2  ;;  %v3368_v42 = vpop.f32.mrb[44].mxu0  ;;  %v1084_v39 = vrot.slane %v1083_v30, 1 }
 0x135   :  { %v3370_v46 = vpop.f32.mrb[44].mxu1  ;;  %v2137_v51 = vsel %vm2127_vm8, %v1876_v10, %v3327_v19  ;;  %v1532_v50 = vrot.slane %v1531_v14, 1  ;;  %v3376_v12 = vpop.f32.mrb[45].mxu0  ;;  %v4074_v29 = vmax.f32 %v3268_v27, 0.0  ;;  %v4075_v58 = vmax.f32 %v3270_v41, 0.0 }
 0x136   :  { %v2193_v22 = vsel %vm2127_vm8, %v1940_v23, %v3330_v33  ;;  %v3378_v56 = vpop.f32.mrb[45].mxu1  ;;  %v3386_v13 = vpop.f32.mrb[46].mxu0  ;;  %v4076_v23 = vmax.f32 %v3318_v20, 0.0  ;;  %v4077_v33 = vmax.f32 %v3320_v60, 0.0  ;;  %v3396_v16 = vmax.f32 %v1083_v30, %v1084_v39 }
 0x137   :  { %v2138_v54 = vsel %vm2129_vm9, %v4074_v29, %v2137_v51  ;;  %v2194_v15 = vsel %vm2129_vm9, %v4075_v58, %v2193_v22  ;;  %v3388_v10 = vpop.f32.mrb[46].mxu1  ;;  %v3398_v27 = vmax.f32 %v1531_v14, %v1532_v50  ;;  %v3400_v38 = vpop.f32.mrb[47].mxu0  ;;  %v1104_v41 = vmax.f32 %v1102_v3, %v1103_v35 }
 0x138   :  { %v2139_v19 = vsel %vm2131_vm10, %v4076_v23, %v2138_v54  ;;  %v2195_v48 = vsel %vm2131_vm10, %v4077_v33, %v2194_v15  ;;  %v1552_v20 = vmax.f32 %v1550_v59, %v1551_v17  ;;  %v523_v60 = vadd.f32 %v3016_v5, %v3122_v2 }
 0x139   :  { %2255 = vst.msk [vmem:[%s4044_s3 + $0x8] sm:$0xff] %vm966_vm3, %v2139_v19  ;;  %2263 = vst.msk [vmem:[%s4044_s3 + $0x48] sm:$0xff] %vm966_vm3, %v2195_v48  ;;  %v779_v47 = vadd.f32 %v3016_v5, %v3124_v6  ;;  %v1881_v31 = vmax.f32 %v3364_v21, 0.0  ;;  %v544_v24 = vadd.f32 %v3144_v28, %v3016_v5  ;;  %v800_v30 = vadd.f32 %v3146_v40, %v3016_v5 }
 0x13a   :  { %v1105_v14 = vrot.slane %v1104_v41, 1  ;;  %v1553_v51 = vrot.slane %v1552_v20, 1  ;;  %v1086_v3 = vsel %vm966_vm3, %v523_v60, -inf  ;;  %v1879_v22 = vmax.f32 %v3396_v16, 0.0 }
 0x13b   :  { %v1534_v59 = vsel %vm966_vm3, %v779_v47, -inf  ;;  %v1087_v2 = vrot.slane %v1086_v3, 4  ;;  %v1121_v6 = vsel %vm966_vm3, %v544_v24, -inf  ;;  %v1569_v17 = vsel %vm966_vm3, %v800_v30, -inf }
 0x13c   :  { %v1535_v35 = vrot.slane %v1534_v59, 4  ;;  %v1943_v39 = vmax.f32 %v3398_v27, 0.0  ;;  %v1122_v28 = vrot.slane %v1121_v6, 4  ;;  %v1570_v50 = vrot.slane %v1569_v17, 4 }
 0x13d   :  { %v1088_v29 = vmax.f32 %v1086_v3, %v1087_v2  ;;  %v536_v54 = vadd.f32 %v3016_v5, %v3148_v45  ;;  %v792_v58 = vadd.f32 %v3016_v5, %v3150_v25  ;;  %v1106_v15 = vmax.f32 %v1104_v41, %v1105_v14 }
 0x13e   :  { %v1536_v40 = vmax.f32 %v1534_v59, %v1535_v35  ;;  %v1554_v23 = vmax.f32 %v1552_v20, %v1553_v51  ;;  %v1123_v19 = vmax.f32 %v1121_v6, %v1122_v28  ;;  %v1571_v33 = vmax.f32 %v1569_v17, %v1570_v50  ;;  %v3436_v35 = vpop.f32.mrb[47].mxu1 }
 0x13f   :  { %v1089_v48 = vrot.slane %v1088_v29, 2  ;;  %v1107_v16 = vsel %vm966_vm3, %v536_v54, -inf  ;;  %v1555_v27 = vsel %vm966_vm3, %v792_v58, -inf  ;;  %v547_v45 = vadd.f32 %v3156_v49, %v3016_v5 }
 0x140   :  { %v1537_v60 = vrot.slane %v1536_v40, 2  ;;  %v1124_v47 = vrot.slane %v1123_v19, 2  ;;  %v1572_v24 = vrot.slane %v1571_v33, 2  ;;  %v1108_v30 = vrot.slane %v1107_v16, 4 }
 0x141   :  { %v1556_v3 = vrot.slane %v1555_v27, 4  ;;  %v1090_v59 = vmax.f32 %v1088_v29, %v1089_v48  ;;  %v803_v25 = vadd.f32 %v3158_v52, %v3016_v5  ;;  %v1128_v28 = vsel %vm966_vm3, %v547_v45, -inf  ;;  %v3442_v45 = vpop.f32.mrb[48].mxu1 }
 0x142   :  { %v1538_v2 = vmax.f32 %v1536_v40, %v1537_v60  ;;  %v1125_v41 = vmax.f32 %v1123_v19, %v1124_v47  ;;  %v1573_v20 = vmax.f32 %v1571_v33, %v1572_v24  ;;  %v1109_v14 = vmax.f32 %v1107_v16, %v1108_v30 }
 0x143   :  { %v1557_v51 = vmax.f32 %v1555_v27, %v1556_v3  ;;  %v1091_v6 = vrot.slane %v1090_v59, 1  ;;  %v1576_v50 = vsel %vm966_vm3, %v803_v25, -inf  ;;  %v1129_v60 = vrot.slane %v1128_v28, 4  ;;  %v3440_v3 = vpop.f32.mrb[48].mxu0 }
 0x144   :  { %v1539_v17 = vrot.slane %v1538_v2, 1  ;;  %v1126_v29 = vrot.slane %v1125_v41, 1  ;;  %v1574_v40 = vrot.slane %v1573_v20, 1  ;;  %v1110_v54 = vrot.slane %v1109_v14, 2 }
 0x145   :  { %v1558_v58 = vrot.slane %v1557_v51, 2  ;;  %v1092_v49 = vmax.f32 %v1090_v59, %v1091_v6  ;;  %v1577_v5 = vrot.slane %v1576_v50, 4  ;;  %v1882_v52 = vmax.f32 %v1106_v15, 0.0  ;;  %v3448_v6 = vpop.f32.mrb[49].mxu0  ;;  %v3450_v15 = vpop.f32.mrb[49].mxu1 }
 0x146   :  { %v1540_v48 = vmax.f32 %v1538_v2, %v1539_v17  ;;  %v1946_v19 = vmax.f32 %v1554_v23, 0.0  ;;  %v1111_v33 = vmax.f32 %v1109_v14, %v1110_v54  ;;  %v1130_v24 = vmax.f32 %v1128_v28, %v1129_v60  ;;  %v3454_v28 = vpop.f32.mrb[50].mxu0  ;;  %v3462_v54 = vpop.f32.mrb[50].mxu1 }
 0x147   :  { %v1559_v16 = vmax.f32 %v1557_v51, %v1558_v58  ;;  %v1880_v27 = vmax.f32 %v1092_v49, 0.0  ;;  %v1578_v30 = vmax.f32 %v1576_v50, %v1577_v5  ;;  %v3444_v25 = vmax.f32 %v1125_v41, %v1126_v29 }
 0x148   :  { %v1944_v47 = vmax.f32 %v1540_v48, 0.0  ;;  %v3446_v43 = vmax.f32 %v1573_v20, %v1574_v40  ;;  %v1112_v59 = vrot.slane %v1111_v33, 1  ;;  %v1131_v51 = vrot.slane %v1130_v24, 2  ;;  %v3466_v48 = vpop.f32.mrb[51].mxu0 }
 0x149   :  { %v1560_v2 = vrot.slane %v1559_v16, 1  ;;  %v2140_v23 = vsel %vm2119_vm4, %v1880_v27, %v1879_v22  ;;  %v1579_v17 = vrot.slane %v1578_v30, 2  ;;  %v4078_v20 = vmax.f32 %v3366_v34, 0.0  ;;  %4079 = vst [vmem:[#allocation25_spill] sm:$0xff] %v3466_v48  ;;  %v3471_v34 = vld [vmem:[%s4043_s2] ss:$0 sm:$0xff] }
 0x14a   :  { %v2196_v14 = vsel %vm2119_vm4, %v1944_v47, %v1943_v39  ;;  %v2141_v41 = vsel %vm2121_vm5, %v1881_v31, %v2140_v23  ;;  %v1113_v29 = vmax.f32 %v1111_v33, %v1112_v59  ;;  %v1132_v58 = vmax.f32 %v1130_v24, %v1131_v51 }
 0x14b   :  { %v2197_v50 = vsel %vm2121_vm5, %v4078_v20, %v2196_v14  ;;  %v1561_v40 = vmax.f32 %v1559_v16, %v1560_v2  ;;  %v2142_v22 = vsel %vm2123_vm6, %v1882_v52, %v2141_v41  ;;  %v1580_v49 = vmax.f32 %v1578_v30, %v1579_v17 }
 0x14c   :  { %v2198_v39 = vsel %vm2123_vm6, %v1946_v19, %v2197_v50  ;;  %v1883_v60 = vmax.f32 %v1113_v29, 0.0  ;;  %v539_v31 = vadd.f32 %v3471_v34, %v3160_v63  ;;  %v795_v5 = vadd.f32 %v3471_v34, %v3162_v0 }
 0x14d   :  { %v1947_v21 = vmax.f32 %v1561_v40, 0.0  ;;  %v1133_v52 = vrot.slane %v1132_v58, 1  ;;  %v1581_v33 = vrot.slane %v1580_v49, 1  ;;  %v560_v19 = vadd.f32 %v3471_v34, %v3172_v44 }
 0x14e   :  { %v816_v16 = vadd.f32 %v3471_v34, %v3174_v26  ;;  %v3482_v27 = vsel %vm2125_vm7, %v1883_v60, %v2142_v22  ;;  %v1114_v24 = vsel %vm966_vm3, %v539_v31, -inf  ;;  %v1562_v63 = vsel %vm966_vm3, %v795_v5, -inf }
 0x14f   :  { %v3485_v47 = vsel %vm2125_vm7, %v1947_v21, %v2198_v39  ;;  %v1115_v59 = vrot.slane %v1114_v24, 4  ;;  %v1563_v2 = vrot.slane %v1562_v63, 4  ;;  %v1149_v44 = vsel %vm966_vm3, %v560_v19, -inf }
 0x150   :  { %v1597_v26 = vsel %vm966_vm3, %v816_v16, -inf  ;;  %v552_v23 = vadd.f32 %v3471_v34, %v3182_v36  ;;  %v808_v14 = vadd.f32 %v3471_v34, %v3184_v61  ;;  %v3497_v51 = vmax.f32 %v1132_v58, %v1133_v52 }
 0x151   :  { %v3499_v17 = vmax.f32 %v1580_v49, %v1581_v33  ;;  %v1116_v41 = vmax.f32 %v1114_v24, %v1115_v59  ;;  %v1564_v20 = vmax.f32 %v1562_v63, %v1563_v2  ;;  %v1150_v50 = vrot.slane %v1149_v44, 4  ;;  %v3509_v2 = vpop.f32.mrb[51].mxu1 }
 0x152   :  { %v1598_v29 = vrot.slane %v1597_v26, 4  ;;  %v1135_v40 = vsel %vm966_vm3, %v552_v23, -inf  ;;  %v1583_v22 = vsel %vm966_vm3, %v808_v14, -inf  ;;  %v563_v61 = vadd.f32 %v3471_v34, %v3194_v32  ;;  %4080 = vst [vmem:[#allocation26_spill] sm:$0xff] %v3509_v2  ;;  %v3511_v2 = vpop.f32.mrb[52].mxu0  ;;  %v3513_v48 = vpop.f32.mrb[52].mxu1 }
 0x153   :  { %v1117_v39 = vrot.slane %v1116_v41, 2  ;;  %v1565_v60 = vrot.slane %v1564_v20, 2  ;;  %v1136_v21 = vrot.slane %v1135_v40, 4  ;;  %v1584_v31 = vrot.slane %v1583_v22, 4 }
 0x154   :  { %v1151_v36 = vmax.f32 %v1149_v44, %v1150_v50  ;;  %v1599_v5 = vmax.f32 %v1597_v26, %v1598_v29  ;;  %v819_v58 = vadd.f32 %v3471_v34, %v3196_v53  ;;  %v1156_v63 = vsel %vm966_vm3, %v563_v61, -inf }
 0x155   :  { %v1118_v49 = vmax.f32 %v1116_v41, %v1117_v39  ;;  %v1566_v52 = vmax.f32 %v1564_v20, %v1565_v60  ;;  %v1137_v33 = vmax.f32 %v1135_v40, %v1136_v21  ;;  %v1585_v19 = vmax.f32 %v1583_v22, %v1584_v31 }
 0x156   :  { %v1152_v16 = vrot.slane %v1151_v36, 2  ;;  %v1600_v24 = vrot.slane %v1599_v5, 2  ;;  %v1604_v59 = vsel %vm966_vm3, %v819_v58, -inf  ;;  %v1157_v29 = vrot.slane %v1156_v63, 4 }
 0x157   :  { %v1119_v44 = vrot.slane %v1118_v49, 1  ;;  %v1567_v26 = vrot.slane %v1566_v52, 1  ;;  %v1138_v23 = vrot.slane %v1137_v33, 2  ;;  %v1586_v14 = vrot.slane %v1585_v19, 2 }
 0x158   :  { %v1153_v32 = vmax.f32 %v1151_v36, %v1152_v16  ;;  %v1601_v50 = vmax.f32 %v1599_v5, %v1600_v24  ;;  %v1605_v53 = vrot.slane %v1604_v59, 4  ;;  %v1158_v21 = vmax.f32 %v1156_v63, %v1157_v29 }
 0x159   :  { %v1120_v41 = vmax.f32 %v1118_v49, %v1119_v44  ;;  %v1568_v20 = vmax.f32 %v1566_v52, %v1567_v26  ;;  %v1139_v40 = vmax.f32 %v1137_v33, %v1138_v23  ;;  %v1587_v22 = vmax.f32 %v1585_v19, %v1586_v14  ;;  %v3519_v33 = vpop.f32.mrb[53].mxu0  ;;  %v3521_v19 = vpop.f32.mrb[53].mxu1 }
 0x15a   :  { %v1154_v39 = vrot.slane %v1153_v32, 1  ;;  %v1602_v60 = vrot.slane %v1601_v50, 1  ;;  %v1606_v31 = vmax.f32 %v1604_v59, %v1605_v53  ;;  %v1159_v49 = vrot.slane %v1158_v21, 2  ;;  %4081 = vst [vmem:[#allocation27_spill] sm:$0xff] %v3521_v19  ;;  %v3529_v44 = vpop.f32.mrb[54].mxu0 }
 0x15b   :  { %v1884_v61 = vmax.f32 %v1120_v41, 0.0  ;;  %v1948_v58 = vmax.f32 %v1568_v20, 0.0  ;;  %v1140_v30 = vrot.slane %v1139_v40, 1  ;;  %v1588_v0 = vrot.slane %v1587_v22, 1  ;;  %4082 = vst [vmem:[#allocation28_spill] sm:$0xff] %v3529_v44  ;;  %v3547_v53 = vpop.f32.mrb[55].mxu0 }
 0x15c   :  { %v3515_v36 = vmax.f32 %v1153_v32, %v1154_v39  ;;  %v3517_v5 = vmax.f32 %v1601_v50, %v1602_v60  ;;  %v1607_v52 = vrot.slane %v1606_v31, 2  ;;  %v1886_v16 = vmax.f32 %v3497_v51, 0.0  ;;  %4086 = vst [vmem:[#allocation30_spill] sm:$0xff] %v3547_v53  ;;  %v4088_v39 = vld [vmem:[#allocation3_spill] sm:$0xff] }
 0x15d   :  { %v1950_v24 = vmax.f32 %v3499_v17, 0.0  ;;  %v2144_v63 = vsel %vm2127_vm8, %v1884_v61, %v3482_v27  ;;  %v2200_v59 = vsel %vm2127_vm8, %v1948_v58, %v3485_v47  ;;  %v4083_v26 = vmax.f32 %v3444_v25, 0.0  ;;  %v3541_v17 = vpop.f32.mrb[54].mxu1  ;;  %v4089_v61 = vld [vmem:[#allocation4_spill] sm:$0xff] }
 0x15e   :  { %v4084_v14 = vmax.f32 %v3446_v43, 0.0  ;;  %v3537_v50 = vmax.f32 %v1139_v40, %v1140_v30  ;;  %v3539_v51 = vmax.f32 %v1587_v22, %v1588_v0  ;;  %4085 = vst [vmem:[#allocation29_spill] sm:$0xff] %v3541_v17  ;;  %v1160_v43 = vmax.f32 %v1158_v21, %v1159_v49  ;;  %v4087_v40 = vld [vmem:[#allocation2_spill] sm:$0xff] }
 0x15f   :  { %v2145_v23 = vsel %vm2129_vm9, %v4083_v26, %v2144_v63  ;;  %v1608_v0 = vmax.f32 %v1606_v31, %v1607_v52  ;;  %v555_v30 = vadd.f32 %v3471_v34, %v3204_v7  ;;  %v811_v41 = vadd.f32 %v3471_v34, %v3206_v8 }
 0x160   :  { %v2201_v32 = vsel %vm2129_vm9, %v4084_v14, %v2200_v59  ;;  %v2146_v27 = vsel %vm2131_vm10, %v1886_v16, %v2145_v23  ;;  %v576_v20 = vadd.f32 %v3471_v34, %v3226_v62  ;;  %v832_v22 = vadd.f32 %v3471_v34, %v4087_v40 }
 0x161   :  { %v2202_v47 = vsel %vm2131_vm10, %v1950_v24, %v2201_v32  ;;  %2256 = vst.msk [vmem:[%s4044_s3 + $0x10] sm:$0xff] %vm966_vm3, %v2146_v27  ;;  %v568_v60 = vadd.f32 %v3471_v34, %v4088_v39  ;;  %v824_v58 = vadd.f32 %v3471_v34, %v4089_v61  ;;  %v1161_v21 = vrot.slane %v1160_v43, 1 }
 0x162   :  { %2264 = vst.msk [vmem:[%s4044_s3 + $0x50] sm:$0xff] %vm966_vm3, %v2202_v47  ;;  %v1609_v31 = vrot.slane %v1608_v0, 1  ;;  %v1142_v49 = vsel %vm966_vm3, %v555_v30, -inf  ;;  %v1590_v7 = vsel %vm966_vm3, %v811_v41, -inf  ;;  %v1177_v16 = vsel %vm966_vm3, %v576_v20, -inf }
 0x163   :  { %v1143_v52 = vrot.slane %v1142_v49, 4  ;;  %v1591_v8 = vrot.slane %v1590_v7, 4  ;;  %v1625_v62 = vsel %vm966_vm3, %v832_v22, -inf  ;;  %v1887_v24 = vmax.f32 %v3537_v50, 0.0 }
 0x164   :  { %v1951_v63 = vmax.f32 %v3539_v51, 0.0  ;;  %v1178_v59 = vrot.slane %v1177_v16, 4  ;;  %v1626_v26 = vrot.slane %v1625_v62, 4  ;;  %v1163_v32 = vsel %vm966_vm3, %v568_v60, -inf  ;;  %v4090_v51 = vld [vmem:[#allocation5_spill] sm:$0xff] }
 0x165   :  { %v1144_v23 = vmax.f32 %v1142_v49, %v1143_v52  ;;  %v1592_v14 = vmax.f32 %v1590_v7, %v1591_v8  ;;  %v1611_v27 = vsel %vm966_vm3, %v824_v58, -inf  ;;  %v1162_v47 = vmax.f32 %v1160_v43, %v1161_v21  ;;  %v4091_v49 = vld [vmem:[#allocation6_spill] sm:$0xff] }
 0x166   :  { %v3577_v30 = vmax.f32 %v1608_v0, %v1609_v31  ;;  %v1179_v41 = vmax.f32 %v1177_v16, %v1178_v59  ;;  %v1627_v40 = vmax.f32 %v1625_v62, %v1626_v26  ;;  %v1164_v22 = vrot.slane %v1163_v32, 4  ;;  %v3585_v16 = vpop.f32.mrb[55].mxu1 }
 0x167   :  { %v1145_v20 = vrot.slane %v1144_v23, 2  ;;  %v1593_v39 = vrot.slane %v1592_v14, 2  ;;  %v1612_v61 = vrot.slane %v1611_v27, 4  ;;  %v579_v29 = vadd.f32 %v3471_v34, %v4090_v51  ;;  %4092 = vst [vmem:[#allocation2_spill] sm:$0xff] %v3585_v16 }
 0x168   :  { %v1180_v50 = vrot.slane %v1179_v41, 2  ;;  %v1628_v25 = vrot.slane %v1627_v40, 2  ;;  %v835_v7 = vadd.f32 %v3471_v34, %v4091_v49  ;;  %v1165_v58 = vmax.f32 %v1163_v32, %v1164_v22 }
 0x169   :  { %v1146_v60 = vmax.f32 %v1144_v23, %v1145_v20  ;;  %v1594_v52 = vmax.f32 %v1592_v14, %v1593_v39  ;;  %v1613_v43 = vmax.f32 %v1611_v27, %v1612_v61  ;;  %v1184_v31 = vsel %vm966_vm3, %v579_v29, -inf }
 0x16a   :  { %v1181_v0 = vmax.f32 %v1179_v41, %v1180_v50  ;;  %v1629_v21 = vmax.f32 %v1627_v40, %v1628_v25  ;;  %v1632_v8 = vsel %vm966_vm3, %v835_v7, -inf  ;;  %v1166_v26 = vrot.slane %v1165_v58, 2  ;;  %v3588_v50 = vpop.f32.mrb[56].mxu0  ;;  %v3590_v7 = vpop.f32.mrb[56].mxu1 }
 0x16b   :  { %v1147_v62 = vrot.slane %v1146_v60, 1  ;;  %v1595_v59 = vrot.slane %v1594_v52, 1  ;;  %v1614_v53 = vrot.slane %v1613_v43, 2  ;;  %v1185_v44 = vrot.slane %v1184_v31, 4 }
 0x16c   :  { %v1182_v51 = vrot.slane %v1181_v0, 1  ;;  %v1630_v17 = vrot.slane %v1629_v21, 1  ;;  %v1633_v49 = vrot.slane %v1632_v8, 4  ;;  %v1167_v32 = vmax.f32 %v1165_v58, %v1166_v26 }
 0x16d   :  { %v1148_v23 = vmax.f32 %v1146_v60, %v1147_v62  ;;  %v1596_v14 = vmax.f32 %v1594_v52, %v1595_v59  ;;  %v1615_v27 = vmax.f32 %v1613_v43, %v1614_v53  ;;  %v1890_v41 = vmax.f32 %v1162_v47, 0.0  ;;  %v3596_v53 = vpop.f32.mrb[57].mxu0  ;;  %v3598_v47 = vpop.f32.mrb[57].mxu1 }
 0x16e   :  { %v1954_v25 = vmax.f32 %v3577_v30, 0.0  ;;  %v1186_v29 = vmax.f32 %v1184_v31, %v1185_v44  ;;  %v1634_v40 = vmax.f32 %v1632_v8, %v1633_v49  ;;  %v1168_v22 = vrot.slane %v1167_v32, 1  ;;  %4093 = vst [vmem:[#allocation3_spill] sm:$0xff] %v3596_v53  ;;  %4094 = vst [vmem:[#allocation4_spill] sm:$0xff] %v3598_v47  ;;  %v3602_v31 = vpop.f32.mrb[58].mxu0  ;;  %v3610_v26 = vpop.f32.mrb[58].mxu1 }
 0x16f   :  { %v1888_v20 = vmax.f32 %v1148_v23, 0.0  ;;  %v1952_v39 = vmax.f32 %v1596_v14, 0.0  ;;  %v1616_v61 = vrot.slane %v1615_v27, 1  ;;  %v3592_v16 = vmax.f32 %v1181_v0, %v1182_v51  ;;  %4095 = vst [vmem:[#allocation5_spill] sm:$0xff] %v3602_v31  ;;  %4098 = vst [vmem:[#allocation6_spill] sm:$0xff] %v3610_v26  ;;  %v3614_v23 = vpop.f32.mrb[59].mxu0 }
 0x170   :  { %v3594_v19 = vmax.f32 %v1629_v21, %v1630_v17  ;;  %v1187_v60 = vrot.slane %v1186_v29, 2  ;;  %v1635_v52 = vrot.slane %v1634_v40, 2  ;;  %v1169_v58 = vmax.f32 %v1167_v32, %v1168_v22  ;;  %4099 = vst [vmem:[#allocation31_spill] sm:$0xff] %v3614_v23  ;;  %v4100_v32 = vld [vmem:[#allocation7_spill] sm:$0xff] }
 0x171   :  { %v2147_v44 = vsel %vm2119_vm4, %v1888_v20, %v1887_v24  ;;  %v2203_v30 = vsel %vm2119_vm4, %v1952_v39, %v1951_v63  ;;  %v1617_v43 = vmax.f32 %v1615_v27, %v1616_v61  ;;  %v4096_v8 = vmax.f32 %v3515_v36, 0.0 }
 0x172   :  { %v4097_v17 = vmax.f32 %v3517_v5, 0.0  ;;  %v1188_v62 = vmax.f32 %v1186_v29, %v1187_v60  ;;  %v1636_v59 = vmax.f32 %v1634_v40, %v1635_v52  ;;  %v1891_v51 = vmax.f32 %v1169_v58, 0.0  ;;  %v4101_v5 = vld [vmem:[#allocation8_spill] sm:$0xff] }
 0x173   :  { %v2148_v0 = vsel %vm2121_vm5, %v4096_v8, %v2147_v44  ;;  %v1955_v63 = vmax.f32 %v1617_v43, 0.0  ;;  %v571_v27 = vadd.f32 %v3471_v34, %v4100_v32  ;;  %v827_v20 = vadd.f32 %v3471_v34, %v4101_v5 }
 0x174   :  { %v2204_v21 = vsel %vm2121_vm5, %v4097_v17, %v2203_v30  ;;  %v2149_v24 = vsel %vm2123_vm6, %v1890_v41, %v2148_v0  ;;  %v1189_v14 = vrot.slane %v1188_v62, 1  ;;  %v1637_v36 = vrot.slane %v1636_v59, 1 }
 0x175   :  { %v2205_v49 = vsel %vm2123_vm6, %v1954_v25, %v2204_v21  ;;  %v3621_v29 = vsel %vm2125_vm7, %v1891_v51, %v2149_v24  ;;  %v592_v41 = vadd.f32 %v3471_v34, %v3256_v55  ;;  %v848_v25 = vadd.f32 %v3471_v34, %v3258_v11  ;;  %v4102_v21 = vld [vmem:[#allocation9_spill] sm:$0xff]  ;;  %v4103_v24 = vld [vmem:[#allocation10_spill] sm:$0xff] }
 0x176   :  { %v3624_v40 = vsel %vm2125_vm7, %v1955_v63, %v2205_v49  ;;  %v1170_v61 = vsel %vm966_vm3, %v571_v27, -inf  ;;  %v1618_v60 = vsel %vm966_vm3, %v827_v20, -inf  ;;  %v3636_v43 = vmax.f32 %v1188_v62, %v1189_v14 }
 0x177   :  { %v1171_v52 = vrot.slane %v1170_v61, 4  ;;  %v1619_v44 = vrot.slane %v1618_v60, 4  ;;  %v1205_v30 = vsel %vm966_vm3, %v592_v41, -inf  ;;  %v1653_v58 = vsel %vm966_vm3, %v848_v25, -inf }
 0x178   :  { %v3638_v55 = vmax.f32 %v1636_v59, %v1637_v36  ;;  %v1206_v8 = vrot.slane %v1205_v30, 4  ;;  %v1654_v11 = vrot.slane %v1653_v58, 4  ;;  %v584_v51 = vadd.f32 %v3471_v34, %v4102_v21 }
 0x179   :  { %v1172_v0 = vmax.f32 %v1170_v61, %v1171_v52  ;;  %v1620_v17 = vmax.f32 %v1618_v60, %v1619_v44  ;;  %v840_v63 = vadd.f32 %v3471_v34, %v4103_v24  ;;  %v595_v27 = vadd.f32 %v3471_v34, %v3264_v37 }
 0x17a   :  { %v1207_v49 = vmax.f32 %v1205_v30, %v1206_v8  ;;  %v1655_v32 = vmax.f32 %v1653_v58, %v1654_v11  ;;  %v851_v62 = vadd.f32 %v3471_v34, %v3266_v9  ;;  %v1191_v36 = vsel %vm966_vm3, %v584_v51, -inf  ;;  %v3652_v11 = vpop.f32.mrb[59].mxu1 }
 0x17b   :  { %v1173_v59 = vrot.slane %v1172_v0, 2  ;;  %v1621_v14 = vrot.slane %v1620_v17, 2  ;;  %v1639_v5 = vsel %vm966_vm3, %v840_v63, -inf  ;;  %v1192_v25 = vrot.slane %v1191_v36, 4  ;;  %4104 = vst [vmem:[#allocation7_spill] sm:$0xff] %v3652_v11 }
 0x17c   :  { %v1208_v20 = vrot.slane %v1207_v49, 2  ;;  %v1656_v41 = vrot.slane %v1655_v32, 2  ;;  %v1640_v61 = vrot.slane %v1639_v5, 4  ;;  %v1212_v44 = vsel %vm966_vm3, %v595_v27, -inf }
 0x17d   :  { %v1174_v60 = vmax.f32 %v1172_v0, %v1173_v59  ;;  %v1622_v52 = vmax.f32 %v1620_v17, %v1621_v14  ;;  %v1660_v30 = vsel %vm966_vm3, %v851_v62, -inf  ;;  %v1193_v8 = vmax.f32 %v1191_v36, %v1192_v25  ;;  %v3656_v25 = vpop.f32.mrb[60].mxu0 }
 0x17e   :  { %v1209_v37 = vmax.f32 %v1207_v49, %v1208_v20  ;;  %v1657_v58 = vmax.f32 %v1655_v32, %v1656_v41  ;;  %v1641_v9 = vmax.f32 %v1639_v5, %v1640_v61  ;;  %v1213_v24 = vrot.slane %v1212_v44, 4  ;;  %4105 = vst [vmem:[#allocation8_spill] sm:$0xff] %v3656_v25  ;;  %v3658_v61 = vpop.f32.mrb[60].mxu1 }
 0x17f   :  { %v1175_v21 = vrot.slane %v1174_v60, 1  ;;  %v1623_v51 = vrot.slane %v1622_v52, 1  ;;  %v1661_v63 = vrot.slane %v1660_v30, 4  ;;  %v1194_v23 = vrot.slane %v1193_v8, 2  ;;  %4106 = vst [vmem:[#allocation9_spill] sm:$0xff] %v3658_v61 }
 0x180   :  { %v1210_v22 = vrot.slane %v1209_v37, 1  ;;  %v1658_v39 = vrot.slane %v1657_v58, 1  ;;  %v1642_v26 = vrot.slane %v1641_v9, 2  ;;  %v1214_v59 = vmax.f32 %v1212_v44, %v1213_v24 }
 0x181   :  { %v1176_v0 = vmax.f32 %v1174_v60, %v1175_v21  ;;  %v1624_v17 = vmax.f32 %v1622_v52, %v1623_v51  ;;  %v1662_v27 = vmax.f32 %v1660_v30, %v1661_v63  ;;  %v1894_v62 = vmax.f32 %v3636_v43, 0.0  ;;  %v3664_v30 = vpop.f32.mrb[61].mxu0  ;;  %v3666_v43 = vpop.f32.mrb[61].mxu1 }
 0x182   :  { %v1958_v49 = vmax.f32 %v3638_v55, 0.0  ;;  %v1195_v32 = vmax.f32 %v1193_v8, %v1194_v23  ;;  %v1643_v14 = vmax.f32 %v1641_v9, %v1642_v26  ;;  %v1215_v20 = vrot.slane %v1214_v59, 2  ;;  %4107 = vst [vmem:[#allocation10_spill] sm:$0xff] %v3664_v30  ;;  %4108 = vst [vmem:[#allocation32_spill] sm:$0xff] %v3666_v43  ;;  %v3672_v9 = vpop.f32.mrb[62].mxu0 }
 0x183   :  { %v1892_v36 = vmax.f32 %v1176_v0, 0.0  ;;  %v1956_v5 = vmax.f32 %v1624_v17, 0.0  ;;  %v1663_v41 = vrot.slane %v1662_v27, 2  ;;  %v3660_v11 = vmax.f32 %v1209_v37, %v1210_v22  ;;  %4109 = vst [vmem:[#allocation33_spill] sm:$0xff] %v3672_v9  ;;  %v3674_v22 = vpop.f32.mrb[62].mxu1  ;;  %v3682_v51 = vpop.f32.mrb[63].mxu0 }
 0x184   :  { %v3662_v60 = vmax.f32 %v1657_v58, %v1658_v39  ;;  %v1196_v52 = vrot.slane %v1195_v32, 1  ;;  %v1644_v44 = vrot.slane %v1643_v14, 1  ;;  %v1216_v55 = vmax.f32 %v1214_v59, %v1215_v20  ;;  %4110 = vst [vmem:[#allocation34_spill] sm:$0xff] %v3674_v22  ;;  %4113 = vst [vmem:[#allocation35_spill] sm:$0xff] %v3682_v51  ;;  %v4116_v20 = vld [vmem:[#allocation13_spill] sm:$0xff]  ;;  %v3726_v9 = vpop.f32.mrb[63].mxu1 }
 0x185   :  { %v2151_v26 = vsel %vm2127_vm8, %v1892_v36, %v3621_v29  ;;  %v2207_v23 = vsel %vm2127_vm8, %v1956_v5, %v3624_v40  ;;  %v1664_v8 = vmax.f32 %v1662_v27, %v1663_v41  ;;  %v4111_v39 = vmax.f32 %v3592_v16, 0.0 }
 0x186   :  { %v4112_v58 = vmax.f32 %v3594_v19, 0.0  ;;  %v3686_v24 = vmax.f32 %v1195_v32, %v1196_v52  ;;  %v3688_v63 = vmax.f32 %v1643_v14, %v1644_v44  ;;  %v587_v0 = vadd.f32 %v3471_v34, %v3272_v57  ;;  %v4115_v32 = vld [vmem:[#allocation12_spill] sm:$0xff]  ;;  %v4117_v52 = vld [vmem:[#allocation14_spill] sm:$0xff] }
 0x187   :  { %v2152_v37 = vsel %vm2129_vm9, %v4111_v39, %v2151_v26  ;;  %v843_v17 = vadd.f32 %v3471_v34, %v3274_v1  ;;  %v1217_v59 = vrot.slane %v1216_v55, 1  ;;  %v1665_v27 = vrot.slane %v1664_v8, 1 }
 0x188   :  { %v2208_v21 = vsel %vm2129_vm9, %v4112_v58, %v2207_v23  ;;  %v2153_v29 = vsel %vm2131_vm10, %v1894_v62, %v2152_v37  ;;  %v4114_v62 = vld [vmem:[#allocation11_spill] sm:$0xff]  ;;  %v864_v14 = vadd.f32 %v3471_v34, %v4115_v32  ;;  %v1198_v36 = vsel %vm966_vm3, %v587_v0, -inf }
 0x189   :  { %v2209_v40 = vsel %vm2131_vm10, %v1958_v49, %v2208_v21  ;;  %2257 = vst.msk [vmem:[%s4044_s3 + $0x18] sm:$0xff] %vm966_vm3, %v2153_v29  ;;  %v608_v49 = vadd.f32 %v3471_v34, %v4114_v62  ;;  %v1646_v5 = vsel %vm966_vm3, %v843_v17, -inf  ;;  %v600_v41 = vadd.f32 %v3471_v34, %v4116_v20  ;;  %v4118_v20 = vld [vmem:[#allocation15_spill] sm:$0xff]  ;;  %4120 = vst [vmem:[#allocation11_spill] sm:$0xff] %v3726_v9 }
 0x18a   :  { %2265 = vst.msk [vmem:[%s4044_s3 + $0x58] sm:$0xff] %vm966_vm3, %v2209_v40  ;;  %v856_v57 = vadd.f32 %v3471_v34, %v4117_v52  ;;  %v1895_v1 = vmax.f32 %v3686_v24, 0.0  ;;  %v1959_v44 = vmax.f32 %v3688_v63, 0.0  ;;  %v1199_v26 = vrot.slane %v1198_v36, 4  ;;  %v4119_v63 = vld [vmem:[#allocation16_spill] sm:$0xff] }
 0x18b   :  { %v1647_v23 = vrot.slane %v1646_v5, 4  ;;  %v1233_v39 = vsel %vm966_vm3, %v608_v49, -inf  ;;  %v1681_v37 = vsel %vm966_vm3, %v864_v14, -inf  ;;  %v1219_v58 = vsel %vm966_vm3, %v600_v41, -inf }
 0x18c   :  { %v1667_v21 = vsel %vm966_vm3, %v856_v57, -inf  ;;  %v1200_v29 = vmax.f32 %v1198_v36, %v1199_v26  ;;  %v1234_v0 = vrot.slane %v1233_v39, 4  ;;  %v1682_v17 = vrot.slane %v1681_v37, 4 }
 0x18d   :  { %v1648_v40 = vmax.f32 %v1646_v5, %v1647_v23  ;;  %v1220_v62 = vrot.slane %v1219_v58, 4  ;;  %v1668_v32 = vrot.slane %v1667_v21, 4  ;;  %v611_v24 = vadd.f32 %v3471_v34, %v4118_v20 }
 0x18e   :  { %v867_v52 = vadd.f32 %v3471_v34, %v4119_v63  ;;  %v1201_v16 = vrot.slane %v1200_v29, 2  ;;  %v1235_v19 = vmax.f32 %v1233_v39, %v1234_v0  ;;  %v1683_v14 = vmax.f32 %v1681_v37, %v1682_v17 }
 0x18f   :  { %v1649_v49 = vrot.slane %v1648_v40, 2  ;;  %v1221_v51 = vmax.f32 %v1219_v58, %v1220_v62  ;;  %v1669_v41 = vmax.f32 %v1667_v21, %v1668_v32  ;;  %v1240_v57 = vsel %vm966_vm3, %v611_v24, -inf }
 0x190   :  { %v1688_v36 = vsel %vm966_vm3, %v867_v52, -inf  ;;  %v1202_v5 = vmax.f32 %v1200_v29, %v1201_v16  ;;  %v1236_v23 = vrot.slane %v1235_v19, 2  ;;  %v1684_v22 = vrot.slane %v1683_v14, 2 }
 0x191   :  { %v1650_v26 = vmax.f32 %v1648_v40, %v1649_v49  ;;  %v1222_v20 = vrot.slane %v1221_v51, 2  ;;  %v1670_v61 = vrot.slane %v1669_v41, 2  ;;  %v1241_v25 = vrot.slane %v1240_v57, 4 }
 0x192   :  { %v1689_v63 = vrot.slane %v1688_v36, 4  ;;  %v1218_v43 = vmax.f32 %v1216_v55, %v1217_v59  ;;  %v1666_v30 = vmax.f32 %v1664_v8, %v1665_v27  ;;  %v1203_v39 = vrot.slane %v1202_v5, 1 }
 0x193   :  { %v1651_v37 = vrot.slane %v1650_v26, 1  ;;  %v1223_v58 = vmax.f32 %v1221_v51, %v1222_v20  ;;  %v1671_v21 = vmax.f32 %v1669_v41, %v1670_v61  ;;  %v1242_v0 = vmax.f32 %v1240_v57, %v1241_v25 }
 0x194   :  { %v1690_v17 = vmax.f32 %v1688_v36, %v1689_v63  ;;  %v1204_v62 = vmax.f32 %v1202_v5, %v1203_v39  ;;  %v1237_v16 = vmax.f32 %v1235_v19, %v1236_v23  ;;  %v1685_v29 = vmax.f32 %v1683_v14, %v1684_v22  ;;  %v4126_v39 = vld [vmem:[#allocation20_spill] sm:$0xff] }
 0x195   :  { %v1652_v32 = vmax.f32 %v1650_v26, %v1651_v37  ;;  %v1224_v40 = vrot.slane %v1223_v58, 1  ;;  %v1672_v24 = vrot.slane %v1671_v21, 1  ;;  %v1243_v52 = vrot.slane %v1242_v0, 2 }
 0x196   :  { %v1691_v49 = vrot.slane %v1690_v17, 2  ;;  %v1898_v9 = vmax.f32 %v1218_v43, 0.0  ;;  %v1962_v31 = vmax.f32 %v1666_v30, 0.0  ;;  %v1896_v47 = vmax.f32 %v1204_v62, 0.0  ;;  %v4128_v62 = vld [vmem:[#allocation22_spill] sm:$0xff] }
 0x197   :  { %v1960_v53 = vmax.f32 %v1652_v32, 0.0  ;;  %v1225_v55 = vmax.f32 %v1223_v58, %v1224_v40  ;;  %v1673_v8 = vmax.f32 %v1671_v21, %v1672_v24  ;;  %v1244_v59 = vmax.f32 %v1242_v0, %v1243_v52  ;;  %v4127_v0 = vld [vmem:[#allocation21_spill] sm:$0xff] }
 0x198   :  { %v1692_v27 = vmax.f32 %v1690_v17, %v1691_v49  ;;  %v2154_v61 = vsel %vm2119_vm4, %v1896_v47, %v1895_v1  ;;  %v1238_v51 = vrot.slane %v1237_v16, 1  ;;  %v1686_v41 = vrot.slane %v1685_v29, 1 }
 0x199   :  { %v2210_v25 = vsel %vm2119_vm4, %v1960_v53, %v1959_v44  ;;  %v4121_v22 = vmax.f32 %v3660_v11, 0.0  ;;  %v4122_v14 = vmax.f32 %v3662_v60, 0.0  ;;  %v1899_v43 = vmax.f32 %v1225_v55, 0.0  ;;  %v4123_v11 = vld [vmem:[#allocation17_spill] sm:$0xff]  ;;  %v4124_v60 = vld [vmem:[#allocation18_spill] sm:$0xff] }
 0x19a   :  { %v1963_v57 = vmax.f32 %v1673_v8, 0.0  ;;  %v1245_v26 = vrot.slane %v1244_v59, 1  ;;  %v1693_v47 = vrot.slane %v1692_v27, 1  ;;  %v603_v44 = vadd.f32 %v3471_v34, %v4123_v11 }
 0x19b   :  { %v2155_v19 = vsel %vm2121_vm5, %v4121_v22, %v2154_v61  ;;  %v2211_v30 = vsel %vm2121_vm5, %v4122_v14, %v2210_v25  ;;  %v859_v23 = vadd.f32 %v3471_v34, %v4124_v60  ;;  %v3748_v20 = vmax.f32 %v1237_v16, %v1238_v51  ;;  %v4130_v14 = vld [vmem:[#allocation24_spill] sm:$0xff] }
 0x19c   :  { %v2156_v36 = vsel %vm2123_vm6, %v1898_v9, %v2155_v19  ;;  %v2212_v5 = vsel %vm2123_vm6, %v1962_v31, %v2211_v30  ;;  %v3750_v63 = vmax.f32 %v1685_v29, %v1686_v41  ;;  %v4125_v9 = vld [vmem:[#allocation19_spill] sm:$0xff]  ;;  %v880_v37 = vadd.f32 %v3471_v34, %v4126_v39 }
 0x19d   :  { %v3739_v53 = vsel %vm2125_vm7, %v1899_v43, %v2156_v36  ;;  %v3742_v1 = vsel %vm2125_vm7, %v1963_v57, %v2212_v5  ;;  %v624_v31 = vadd.f32 %v3471_v34, %v4125_v9  ;;  %v1226_v58 = vsel %vm966_vm3, %v603_v44, -inf }
 0x19e   :  { %v1674_v21 = vsel %vm966_vm3, %v859_v23, -inf  ;;  %v616_v17 = vadd.f32 %v3471_v34, %v4127_v0  ;;  %v872_v32 = vadd.f32 %v3471_v34, %v4128_v62  ;;  %v3762_v16 = vmax.f32 %v1244_v59, %v1245_v26  ;;  %v4129_v59 = vld [vmem:[#allocation23_spill] sm:$0xff] }
 0x19f   :  { %v3764_v29 = vmax.f32 %v1692_v27, %v1693_v47  ;;  %v1227_v40 = vrot.slane %v1226_v58, 4  ;;  %v1675_v24 = vrot.slane %v1674_v21, 4  ;;  %v1261_v52 = vsel %vm966_vm3, %v624_v31, -inf }
 0x1a0   :  { %v1709_v49 = vsel %vm966_vm3, %v880_v37, -inf  ;;  %v1247_v55 = vsel %vm966_vm3, %v616_v17, -inf  ;;  %v1695_v8 = vsel %vm966_vm3, %v872_v32, -inf  ;;  %v1262_v51 = vrot.slane %v1261_v52, 4 }
 0x1a1   :  { %v1228_v61 = vmax.f32 %v1226_v58, %v1227_v40  ;;  %v1676_v25 = vmax.f32 %v1674_v21, %v1675_v24  ;;  %v1710_v41 = vrot.slane %v1709_v49, 4  ;;  %v1248_v22 = vrot.slane %v1247_v55, 4 }
 0x1a2   :  { %v1696_v19 = vrot.slane %v1695_v8, 4  ;;  %v627_v27 = vadd.f32 %v3471_v34, %v4129_v59  ;;  %v883_v30 = vadd.f32 %v3471_v34, %v4130_v14  ;;  %v1263_v36 = vmax.f32 %v1261_v52, %v1262_v51 }
 0x1a3   :  { %v1229_v43 = vrot.slane %v1228_v61, 2  ;;  %v1677_v57 = vrot.slane %v1676_v25, 2  ;;  %v1711_v5 = vmax.f32 %v1709_v49, %v1710_v41  ;;  %v1249_v26 = vmax.f32 %v1247_v55, %v1248_v22 }
 0x1a4   :  { %v1697_v47 = vmax.f32 %v1695_v8, %v1696_v19  ;;  %v1268_v11 = vsel %vm966_vm3, %v627_v27, -inf  ;;  %v1716_v44 = vsel %vm966_vm3, %v883_v30, -inf  ;;  %v1264_v9 = vrot.slane %v1263_v36, 2 }
 0x1a5   :  { %v1230_v60 = vmax.f32 %v1228_v61, %v1229_v43  ;;  %v1678_v23 = vmax.f32 %v1676_v25, %v1677_v57  ;;  %v1712_v31 = vrot.slane %v1711_v5, 2  ;;  %v1250_v39 = vrot.slane %v1249_v26, 2 }
 0x1a6   :  { %v1698_v37 = vrot.slane %v1697_v47, 2  ;;  %v1269_v58 = vrot.slane %v1268_v11, 4  ;;  %v1717_v21 = vrot.slane %v1716_v44, 4  ;;  %v1265_v62 = vmax.f32 %v1263_v36, %v1264_v9 }
 0x1a7   :  { %v1231_v0 = vrot.slane %v1230_v60, 1  ;;  %v1679_v17 = vrot.slane %v1678_v23, 1  ;;  %v1713_v32 = vmax.f32 %v1711_v5, %v1712_v31  ;;  %v1251_v40 = vmax.f32 %v1249_v26, %v1250_v39 }
 0x1a8   :  { %v1699_v24 = vmax.f32 %v1697_v47, %v1698_v37  ;;  %v1270_v52 = vmax.f32 %v1268_v11, %v1269_v58  ;;  %v1718_v49 = vmax.f32 %v1716_v44, %v1717_v21  ;;  %v1266_v51 = vrot.slane %v1265_v62, 1 }
 0x1a9   :  { %v1232_v55 = vmax.f32 %v1230_v60, %v1231_v0  ;;  %v1680_v8 = vmax.f32 %v1678_v23, %v1679_v17  ;;  %v1714_v41 = vrot.slane %v1713_v32, 1  ;;  %v1252_v61 = vrot.slane %v1251_v40, 1 }
 0x1aa   :  { %v1700_v25 = vrot.slane %v1699_v24, 1  ;;  %v1271_v22 = vrot.slane %v1270_v52, 2  ;;  %v1719_v19 = vrot.slane %v1718_v49, 2  ;;  %v3776_v14 = vmax.f32 %v1265_v62, %v1266_v51 }
 0x1ab   :  { %v1900_v59 = vmax.f32 %v1232_v55, 0.0  ;;  %v1964_v27 = vmax.f32 %v1680_v8, 0.0  ;;  %v3778_v30 = vmax.f32 %v1713_v32, %v1714_v41  ;;  %v1901_v43 = vmax.f32 %v3748_v20, 0.0 }
 0x1ac   :  { %v1965_v57 = vmax.f32 %v3750_v63, 0.0  ;;  %v1902_v36 = vmax.f32 %v3762_v16, 0.0  ;;  %v1966_v5 = vmax.f32 %v3764_v29, 0.0  ;;  %v3788_v11 = vmax.f32 %v1251_v40, %v1252_v61 }
 0x1ad   :  { %v2158_v26 = vsel %vm2127_vm8, %v1900_v59, %v3739_v53  ;;  %v2214_v47 = vsel %vm2127_vm8, %v1964_v27, %v3742_v1  ;;  %v3790_v44 = vmax.f32 %v1699_v24, %v1700_v25  ;;  %v1272_v23 = vmax.f32 %v1270_v52, %v1271_v22 }
 0x1ae   :  { %v2159_v60 = vsel %vm2129_vm9, %v1901_v43, %v2158_v26  ;;  %v2215_v20 = vsel %vm2129_vm9, %v1965_v57, %v2214_v47  ;;  %v1720_v63 = vmax.f32 %v1718_v49, %v1719_v19  ;;  %v1905_v9 = vmax.f32 %v3776_v14, 0.0 }
 0x1af   :  { %v2160_v16 = vsel %vm2131_vm10, %v1902_v36, %v2159_v60  ;;  %v2216_v29 = vsel %vm2131_vm10, %v1966_v5, %v2215_v20  ;;  %v1969_v53 = vmax.f32 %v3778_v30, 0.0  ;;  %v619_v1 = vadd.f32 %v3471_v34, %v3360_v4 }
 0x1b0   :  { %2258 = vst.msk [vmem:[%s4044_s3 + $0x20] sm:$0xff] %vm966_vm3, %v2160_v16  ;;  %2266 = vst.msk [vmem:[%s4044_s3 + $0x60] sm:$0xff] %vm966_vm3, %v2216_v29  ;;  %v875_v31 = vadd.f32 %v3471_v34, %v3362_v18  ;;  %v640_v39 = vadd.f32 %v3471_v34, %v3368_v42  ;;  %v896_v37 = vadd.f32 %v3471_v34, %v3370_v46  ;;  %v1903_v58 = vmax.f32 %v3788_v11, 0.0 }
 0x1b1   :  { %v1967_v21 = vmax.f32 %v3790_v44, 0.0  ;;  %v632_v0 = vadd.f32 %v3471_v34, %v3376_v12  ;;  %v888_v17 = vadd.f32 %v3471_v34, %v3378_v56  ;;  %v1254_v4 = vsel %vm966_vm3, %v619_v1, -inf }
 0x1b2   :  { %v1702_v18 = vsel %vm966_vm3, %v875_v31, -inf  ;;  %v1289_v62 = vsel %vm966_vm3, %v640_v39, -inf  ;;  %v1737_v42 = vsel %vm966_vm3, %v896_v37, -inf  ;;  %v1273_v32 = vrot.slane %v1272_v23, 1 }
 0x1b3   :  { %v1721_v46 = vrot.slane %v1720_v63, 1  ;;  %v1255_v40 = vrot.slane %v1254_v4, 4  ;;  %v1703_v24 = vrot.slane %v1702_v18, 4  ;;  %v1290_v52 = vrot.slane %v1289_v62, 4 }
 0x1b4   :  { %v1738_v49 = vrot.slane %v1737_v42, 4  ;;  %v1275_v55 = vsel %vm966_vm3, %v632_v0, -inf  ;;  %v1723_v12 = vsel %vm966_vm3, %v888_v17, -inf  ;;  %v643_v22 = vadd.f32 %v3471_v34, %v3386_v13 }
 0x1b5   :  { %v1256_v8 = vmax.f32 %v1254_v4, %v1255_v40  ;;  %v1704_v56 = vmax.f32 %v1702_v18, %v1703_v24  ;;  %v1276_v51 = vrot.slane %v1275_v55, 4  ;;  %v1724_v41 = vrot.slane %v1723_v12, 4 }
 0x1b6   :  { %v1291_v61 = vmax.f32 %v1289_v62, %v1290_v52  ;;  %v1739_v25 = vmax.f32 %v1737_v42, %v1738_v49  ;;  %v899_v19 = vadd.f32 %v3471_v34, %v3388_v10  ;;  %v1296_v26 = vsel %vm966_vm3, %v643_v22, -inf }
 0x1b7   :  { %v1257_v59 = vrot.slane %v1256_v8, 2  ;;  %v1705_v27 = vrot.slane %v1704_v56, 2  ;;  %v1277_v43 = vmax.f32 %v1275_v55, %v1276_v51  ;;  %v1725_v57 = vmax.f32 %v1723_v12, %v1724_v41 }
 0x1b8   :  { %v1292_v36 = vrot.slane %v1291_v61, 2  ;;  %v1740_v5 = vrot.slane %v1739_v25, 2  ;;  %v1744_v47 = vsel %vm966_vm3, %v899_v19, -inf  ;;  %v1274_v1 = vmax.f32 %v1272_v23, %v1273_v32 }
 0x1b9   :  { %v1258_v60 = vmax.f32 %v1256_v8, %v1257_v59  ;;  %v1706_v20 = vmax.f32 %v1704_v56, %v1705_v27  ;;  %v1278_v16 = vrot.slane %v1277_v43, 2  ;;  %v1726_v29 = vrot.slane %v1725_v57, 2 }
 0x1ba   :  { %v1722_v31 = vmax.f32 %v1720_v63, %v1721_v46  ;;  %v1297_v13 = vrot.slane %v1296_v26, 4  ;;  %v1745_v39 = vrot.slane %v1744_v47, 4  ;;  %v1293_v4 = vmax.f32 %v1291_v61, %v1292_v36 }
 0x1bb   :  { %v1259_v37 = vrot.slane %v1258_v60, 1  ;;  %v1707_v10 = vrot.slane %v1706_v20, 1  ;;  %v1279_v0 = vmax.f32 %v1277_v43, %v1278_v16  ;;  %v1727_v17 = vmax.f32 %v1725_v57, %v1726_v29 }
 0x1bc   :  { %v1741_v18 = vmax.f32 %v1739_v25, %v1740_v5  ;;  %v1298_v62 = vmax.f32 %v1296_v26, %v1297_v13  ;;  %v1746_v42 = vmax.f32 %v1744_v47, %v1745_v39  ;;  %v1906_v55 = vmax.f32 %v1274_v1, 0.0 }
 0x1bd   :  { %v1260_v40 = vmax.f32 %v1258_v60, %v1259_v37  ;;  %v1708_v24 = vmax.f32 %v1706_v20, %v1707_v10  ;;  %v1280_v52 = vrot.slane %v1279_v0, 1  ;;  %v1728_v49 = vrot.slane %v1727_v17, 1  ;;  %v3861_v60 = vld [vmem:[%s4043_s2] ss:$0 sm:$0xff] }
 0x1be   :  { %v1970_v12 = vmax.f32 %v1722_v31, 0.0  ;;  %v1299_v8 = vrot.slane %v1298_v62, 2  ;;  %v1747_v56 = vrot.slane %v1746_v42, 2  ;;  %v1294_v51 = vrot.slane %v1293_v4, 1 }
 0x1bf   :  { %v1904_v23 = vmax.f32 %v1260_v40, 0.0  ;;  %v1968_v63 = vmax.f32 %v1708_v24, 0.0  ;;  %v1281_v32 = vmax.f32 %v1279_v0, %v1280_v52  ;;  %v1729_v46 = vmax.f32 %v1727_v17, %v1728_v49 }
 0x1c0   :  { %v1742_v41 = vrot.slane %v1741_v18, 1  ;;  %v1300_v22 = vmax.f32 %v1298_v62, %v1299_v8  ;;  %v1748_v19 = vmax.f32 %v1746_v42, %v1747_v56  ;;  %v635_v44 = vadd.f32 %v3471_v34, %v3400_v38 }
 0x1c1   :  { %v2161_v61 = vsel %vm2119_vm4, %v1904_v23, %v1903_v58  ;;  %v2217_v25 = vsel %vm2119_vm4, %v1968_v63, %v1967_v21  ;;  %v1907_v59 = vmax.f32 %v1281_v32, 0.0  ;;  %v1971_v27 = vmax.f32 %v1729_v46, 0.0 }
 0x1c2   :  { %v2162_v43 = vsel %vm2121_vm5, %v1905_v9, %v2161_v61  ;;  %v2218_v57 = vsel %vm2121_vm5, %v1969_v53, %v2217_v25  ;;  %v1301_v36 = vrot.slane %v1300_v22, 1  ;;  %v1749_v5 = vrot.slane %v1748_v19, 1 }
 0x1c3   :  { %v2163_v11 = vsel %vm2123_vm6, %v1906_v55, %v2162_v43  ;;  %v2219_v58 = vsel %vm2123_vm6, %v1970_v12, %v2218_v57  ;;  %v891_v21 = vadd.f32 %v3471_v34, %v3436_v35  ;;  %v3850_v26 = vmax.f32 %v1293_v4, %v1294_v51 }
 0x1c4   :  { %v3852_v14 = vmax.f32 %v1741_v18, %v1742_v41  ;;  %v2164_v30 = vsel %vm2125_vm7, %v1907_v59, %v2163_v11  ;;  %v2220_v9 = vsel %vm2125_vm7, %v1971_v27, %v2219_v58  ;;  %v1282_v53 = vsel %vm966_vm3, %v635_v44, -inf }
 0x1c5   :  { %v1730_v47 = vsel %vm966_vm3, %v891_v21, -inf  ;;  %v656_v38 = vadd.f32 %v3861_v60, %v3440_v3  ;;  %v912_v35 = vadd.f32 %v3861_v60, %v3442_v45  ;;  %v1302_v34 = vmax.f32 %v1300_v22, %v1301_v36 }
 0x1c6   :  { %v1750_v20 = vmax.f32 %v1748_v19, %v1749_v5  ;;  %v1283_v16 = vrot.slane %v1282_v53, 4  ;;  %v1731_v29 = vrot.slane %v1730_v47, 4  ;;  %v648_v13 = vadd.f32 %v3861_v60, %v3448_v6 }
 0x1c7   :  { %v1317_v1 = vsel %vm966_vm3, %v656_v38, -inf  ;;  %v1765_v31 = vsel %vm966_vm3, %v912_v35, -inf  ;;  %v904_v39 = vadd.f32 %v3861_v60, %v3450_v15  ;;  %v659_v4 = vadd.f32 %v3861_v60, %v3454_v28 }
 0x1c8   :  { %v1284_v37 = vmax.f32 %v1282_v53, %v1283_v16  ;;  %v1732_v10 = vmax.f32 %v1730_v47, %v1731_v29  ;;  %v1318_v3 = vrot.slane %v1317_v1, 4  ;;  %v1766_v0 = vrot.slane %v1765_v31, 4 }
 0x1c9   :  { %v1303_v45 = vsel %vm966_vm3, %v648_v13, -inf  ;;  %v1751_v17 = vsel %vm966_vm3, %v904_v39, -inf  ;;  %v915_v18 = vadd.f32 %v3861_v60, %v3462_v54  ;;  %v1324_v52 = vsel %vm966_vm3, %v659_v4, -inf }
 0x1ca   :  { %v1285_v62 = vrot.slane %v1284_v37, 2  ;;  %v1733_v42 = vrot.slane %v1732_v10, 2  ;;  %v1319_v6 = vmax.f32 %v1317_v1, %v1318_v3  ;;  %v1767_v40 = vmax.f32 %v1765_v31, %v1766_v0  ;;  %v4132_v3 = vld [vmem:[#allocation26_spill] sm:$0xff] }
 0x1cb   :  { %v1304_v24 = vrot.slane %v1303_v45, 4  ;;  %v1752_v15 = vrot.slane %v1751_v17, 4  ;;  %v1772_v49 = vsel %vm966_vm3, %v915_v18, -inf  ;;  %v1325_v28 = vrot.slane %v1324_v52, 4 }
 0x1cc   :  { %v1286_v55 = vmax.f32 %v1284_v37, %v1285_v62  ;;  %v1734_v12 = vmax.f32 %v1732_v10, %v1733_v42  ;;  %v1320_v8 = vrot.slane %v1319_v6, 2  ;;  %v1768_v56 = vrot.slane %v1767_v40, 2  ;;  %v4131_v37 = vld [vmem:[#allocation25_spill] sm:$0xff] }
 0x1cd   :  { %v1305_v23 = vmax.f32 %v1303_v45, %v1304_v24  ;;  %v1753_v63 = vmax.f32 %v1751_v17, %v1752_v15  ;;  %v1773_v32 = vrot.slane %v1772_v49, 4  ;;  %v1326_v61 = vmax.f32 %v1324_v52, %v1325_v28 }
 0x1ce   :  { %v1287_v46 = vrot.slane %v1286_v55, 1  ;;  %v1735_v54 = vrot.slane %v1734_v12, 1  ;;  %v1321_v51 = vmax.f32 %v1319_v6, %v1320_v8  ;;  %v1769_v41 = vmax.f32 %v1767_v40, %v1768_v56  ;;  %v4133_v40 = vld [vmem:[#allocation27_spill] sm:$0xff] }
 0x1cf   :  { %v1306_v22 = vrot.slane %v1305_v23, 2  ;;  %v1754_v19 = vrot.slane %v1753_v63, 2  ;;  %v1774_v25 = vmax.f32 %v1772_v49, %v1773_v32  ;;  %v1909_v36 = vmax.f32 %v3850_v26, 0.0 }
 0x1d0   :  { %v1288_v59 = vmax.f32 %v1286_v55, %v1287_v46  ;;  %v1736_v27 = vmax.f32 %v1734_v12, %v1735_v54  ;;  %v1322_v43 = vrot.slane %v1321_v51, 1  ;;  %v1770_v57 = vrot.slane %v1769_v41, 1  ;;  %v4134_v46 = vld [vmem:[#allocation28_spill] sm:$0xff] }
 0x1d1   :  { %v1973_v5 = vmax.f32 %v3852_v14, 0.0  ;;  %v1307_v44 = vmax.f32 %v1305_v23, %v1306_v22  ;;  %v1755_v21 = vmax.f32 %v1753_v63, %v1754_v19  ;;  %v1910_v53 = vmax.f32 %v1302_v34, 0.0 }
 0x1d2   :  { %v1908_v11 = vmax.f32 %v1288_v59, 0.0  ;;  %v1972_v58 = vmax.f32 %v1736_v27, 0.0  ;;  %v1974_v47 = vmax.f32 %v1750_v20, 0.0  ;;  %v1327_v38 = vrot.slane %v1326_v61, 2 }
 0x1d3   :  { %v1775_v35 = vrot.slane %v1774_v25, 2  ;;  %v3885_v1 = vmax.f32 %v1321_v51, %v1322_v43  ;;  %v3887_v31 = vmax.f32 %v1769_v41, %v1770_v57  ;;  %v1308_v34 = vrot.slane %v1307_v44, 1  ;;  %v4135_v51 = vld [vmem:[#allocation29_spill] sm:$0xff] }
 0x1d4   :  { %v2165_v16 = vsel %vm2127_vm8, %v1908_v11, %v2164_v30  ;;  %v2221_v29 = vsel %vm2127_vm8, %v1972_v58, %v2220_v9  ;;  %v1756_v20 = vrot.slane %v1755_v21, 1  ;;  %v1328_v30 = vmax.f32 %v1326_v61, %v1327_v38 }
 0x1d5   :  { %v2166_v26 = vsel %vm2129_vm9, %v1909_v36, %v2165_v16  ;;  %v2222_v14 = vsel %vm2129_vm9, %v1973_v5, %v2221_v29  ;;  %v1776_v9 = vmax.f32 %v1774_v25, %v1775_v35  ;;  %v651_v10 = vadd.f32 %v3861_v60, %v4131_v37 }
 0x1d6   :  { %v2167_v13 = vsel %vm2131_vm10, %v1910_v53, %v2166_v26  ;;  %v2223_v39 = vsel %vm2131_vm10, %v1974_v47, %v2222_v14  ;;  %v907_v0 = vadd.f32 %v3861_v60, %v4132_v3  ;;  %v1913_v45 = vmax.f32 %v3885_v1, 0.0  ;;  %v4136_v1 = vld [vmem:[#allocation30_spill] sm:$0xff] }
 0x1d7   :  { %2259 = vst.msk [vmem:[%s4044_s3 + $0x28] sm:$0xff] %vm966_vm3, %v2167_v13  ;;  %2267 = vst.msk [vmem:[%s4044_s3 + $0x68] sm:$0xff] %vm966_vm3, %v2223_v39  ;;  %v1977_v17 = vmax.f32 %v3887_v31, 0.0  ;;  %v672_v4 = vadd.f32 %v3861_v60, %v3511_v2  ;;  %v928_v18 = vadd.f32 %v3861_v60, %v3513_v48  ;;  %v1310_v62 = vsel %vm966_vm3, %v651_v10, -inf  ;;  %v4137_v31 = vld [vmem:[#allocation2_spill] sm:$0xff] }
 0x1d8   :  { %v1758_v42 = vsel %vm966_vm3, %v907_v0, -inf  ;;  %v664_v6 = vadd.f32 %v3861_v60, %v3519_v33  ;;  %v920_v24 = vadd.f32 %v3861_v60, %v4133_v40  ;;  %v1309_v15 = vmax.f32 %v1307_v44, %v1308_v34 }
 0x1d9   :  { %v1757_v52 = vmax.f32 %v1755_v21, %v1756_v20  ;;  %v1311_v49 = vrot.slane %v1310_v62, 4  ;;  %v1759_v55 = vrot.slane %v1758_v42, 4  ;;  %v1345_v12 = vsel %vm966_vm3, %v672_v4, -inf }
 0x1da   :  { %v1793_v2 = vsel %vm966_vm3, %v928_v18, -inf  ;;  %v1331_v48 = vsel %vm966_vm3, %v664_v6, -inf  ;;  %v1779_v8 = vsel %vm966_vm3, %v920_v24, -inf  ;;  %v1346_v63 = vrot.slane %v1345_v12, 4 }
 0x1db   :  { %v1312_v56 = vmax.f32 %v1310_v62, %v1311_v49  ;;  %v1760_v23 = vmax.f32 %v1758_v42, %v1759_v55  ;;  %v1794_v28 = vrot.slane %v1793_v2, 4  ;;  %v1332_v33 = vrot.slane %v1331_v48, 4 }
 0x1dc   :  { %v1780_v32 = vrot.slane %v1779_v8, 4  ;;  %v675_v54 = vadd.f32 %v3861_v60, %v4134_v46  ;;  %v931_v41 = vadd.f32 %v3861_v60, %v4135_v51  ;;  %v1329_v22 = vrot.slane %v1328_v30, 1 }
 0x1dd   :  { %v1777_v19 = vrot.slane %v1776_v9, 1  ;;  %v1313_v61 = vrot.slane %v1312_v56, 2  ;;  %v1761_v25 = vrot.slane %v1760_v23, 2  ;;  %v1333_v59 = vmax.f32 %v1331_v48, %v1332_v33 }
 0x1de   :  { %v1781_v27 = vmax.f32 %v1779_v8, %v1780_v32  ;;  %v1352_v43 = vsel %vm966_vm3, %v675_v54, -inf  ;;  %v1800_v57 = vsel %vm966_vm3, %v931_v41, -inf  ;;  %v1347_v11 = vmax.f32 %v1345_v12, %v1346_v63 }
 0x1df   :  { %v1314_v36 = vmax.f32 %v1312_v56, %v1313_v61  ;;  %v1762_v5 = vmax.f32 %v1760_v23, %v1761_v25  ;;  %v1795_v58 = vmax.f32 %v1793_v2, %v1794_v28  ;;  %v1334_v44 = vrot.slane %v1333_v59, 2  ;;  %v4138_v25 = vld [vmem:[#allocation3_spill] sm:$0xff] }
 0x1e0   :  { %v1782_v21 = vrot.slane %v1781_v27, 2  ;;  %v1353_v53 = vrot.slane %v1352_v43, 4  ;;  %v1801_v47 = vrot.slane %v1800_v57, 4  ;;  %v1330_v38 = vmax.f32 %v1328_v30, %v1329_v22 }
 0x1e1   :  { %v1778_v35 = vmax.f32 %v1776_v9, %v1777_v19  ;;  %v1315_v16 = vrot.slane %v1314_v36, 1  ;;  %v1763_v29 = vrot.slane %v1762_v5, 1  ;;  %v1335_v26 = vmax.f32 %v1333_v59, %v1334_v44 }
 0x1e2   :  { %v1783_v14 = vmax.f32 %v1781_v27, %v1782_v21  ;;  %v1354_v13 = vmax.f32 %v1352_v43, %v1353_v53  ;;  %v1802_v39 = vmax.f32 %v1800_v57, %v1801_v47  ;;  %v1348_v37 = vrot.slane %v1347_v11, 2  ;;  %v4139_v27 = vld [vmem:[#allocation4_spill] sm:$0xff] }
 0x1e3   :  { %v1316_v34 = vmax.f32 %v1314_v36, %v1315_v16  ;;  %v1764_v20 = vmax.f32 %v1762_v5, %v1763_v29  ;;  %v1796_v10 = vrot.slane %v1795_v58, 2  ;;  %v1911_v3 = vmax.f32 %v1309_v15, 0.0  ;;  %v4140_v29 = vld [vmem:[#allocation5_spill] sm:$0xff] }
 0x1e4   :  { %v1975_v0 = vmax.f32 %v1757_v52, 0.0  ;;  %v1336_v4 = vrot.slane %v1335_v26, 1  ;;  %v1784_v18 = vrot.slane %v1783_v14, 1  ;;  %v1355_v6 = vrot.slane %v1354_v13, 2 }
 0x1e5   :  { %v1912_v62 = vmax.f32 %v1316_v34, 0.0  ;;  %v1976_v42 = vmax.f32 %v1764_v20, 0.0  ;;  %v1803_v40 = vrot.slane %v1802_v39, 2  ;;  %v1914_v30 = vmax.f32 %v1330_v38, 0.0 }
 0x1e6   :  { %v1978_v9 = vmax.f32 %v1778_v35, 0.0  ;;  %v1337_v24 = vmax.f32 %v1335_v26, %v1336_v4  ;;  %v1785_v49 = vmax.f32 %v1783_v14, %v1784_v18  ;;  %v1349_v2 = vmax.f32 %v1347_v11, %v1348_v37  ;;  %v4141_v14 = vld [vmem:[#allocation6_spill] sm:$0xff] }
 0x1e7   :  { %v2168_v55 = vsel %vm2119_vm4, %v1912_v62, %v1911_v3  ;;  %v2224_v12 = vsel %vm2119_vm4, %v1976_v42, %v1975_v0  ;;  %v1797_v48 = vmax.f32 %v1795_v58, %v1796_v10  ;;  %v1356_v28 = vmax.f32 %v1354_v13, %v1355_v6 }
 0x1e8   :  { %v2169_v15 = vsel %vm2121_vm5, %v1913_v45, %v2168_v55  ;;  %v2225_v52 = vsel %vm2121_vm5, %v1977_v17, %v2224_v12  ;;  %v1915_v8 = vmax.f32 %v1337_v24, 0.0  ;;  %v1979_v56 = vmax.f32 %v1785_v49, 0.0 }
 0x1e9   :  { %v2170_v23 = vsel %vm2123_vm6, %v1914_v30, %v2169_v15  ;;  %v2226_v63 = vsel %vm2123_vm6, %v1978_v9, %v2225_v52  ;;  %v1804_v33 = vmax.f32 %v1802_v39, %v1803_v40  ;;  %v667_v45 = vadd.f32 %v3861_v60, %v4136_v1 }
 0x1ea   :  { %v3938_v32 = vsel %vm2125_vm7, %v1915_v8, %v2170_v23  ;;  %v3941_v46 = vsel %vm2125_vm7, %v1979_v56, %v2226_v63  ;;  %v923_v17 = vadd.f32 %v3861_v60, %v4137_v31  ;;  %v1350_v54 = vrot.slane %v1349_v2, 1 }
 0x1eb   :  { %v1798_v51 = vrot.slane %v1797_v48, 1  ;;  %v688_v41 = vadd.f32 %v3861_v60, %v3588_v50  ;;  %v944_v22 = vadd.f32 %v3861_v60, %v3590_v7  ;;  %v1338_v19 = vsel %vm966_vm3, %v667_v45, -inf }
 0x1ec   :  { %v1786_v61 = vsel %vm966_vm3, %v923_v17, -inf  ;;  %v680_v59 = vadd.f32 %v3861_v60, %v4138_v25  ;;  %v936_v43 = vadd.f32 %v3861_v60, %v4139_v27  ;;  %v1357_v57 = vrot.slane %v1356_v28, 1 }
 0x1ed   :  { %v1805_v36 = vrot.slane %v1804_v33, 1  ;;  %v1339_v5 = vrot.slane %v1338_v19, 4  ;;  %v1787_v11 = vrot.slane %v1786_v61, 4  ;;  %v1373_v58 = vsel %vm966_vm3, %v688_v41, -inf }
 0x1ee   :  { %v1821_v50 = vsel %vm966_vm3, %v944_v22, -inf  ;;  %v1359_v7 = vsel %vm966_vm3, %v680_v59, -inf  ;;  %v1807_v44 = vsel %vm966_vm3, %v936_v43, -inf  ;;  %v1374_v47 = vrot.slane %v1373_v58, 4 }
 0x1ef   :  { %v1340_v21 = vmax.f32 %v1338_v19, %v1339_v5  ;;  %v1788_v53 = vmax.f32 %v1786_v61, %v1787_v11  ;;  %v1822_v38 = vrot.slane %v1821_v50, 4  ;;  %v1360_v35 = vrot.slane %v1359_v7, 4  ;;  %v4142_v11 = vld [vmem:[#allocation31_spill] sm:$0xff] }
 0x1f0   :  { %v1808_v16 = vrot.slane %v1807_v44, 4  ;;  %v691_v26 = vadd.f32 %v3861_v60, %v4140_v29  ;;  %v947_v13 = vadd.f32 %v3861_v60, %v4141_v14  ;;  %v1375_v20 = vmax.f32 %v1373_v58, %v1374_v47 }
 0x1f1   :  { %v1341_v39 = vrot.slane %v1340_v21, 2  ;;  %v1789_v34 = vrot.slane %v1788_v53, 2  ;;  %v1823_v37 = vmax.f32 %v1821_v50, %v1822_v38  ;;  %v1361_v10 = vmax.f32 %v1359_v7, %v1360_v35  ;;  %v4143_v50 = vld [vmem:[#allocation7_spill] sm:$0xff]  ;;  %v4145_v38 = vld [vmem:[#allocation32_spill] sm:$0xff] }
 0x1f2   :  { %v1809_v3 = vmax.f32 %v1807_v44, %v1808_v16  ;;  %v1380_v0 = vsel %vm966_vm3, %v691_v26, -inf  ;;  %v1828_v4 = vsel %vm966_vm3, %v947_v13, -inf  ;;  %v1376_v42 = vrot.slane %v1375_v20, 2  ;;  %v4146_v26 = vld [vmem:[#allocation8_spill] sm:$0xff]  ;;  %v4147_v13 = vld [vmem:[#allocation9_spill] sm:$0xff] }
 0x1f3   :  { %v1342_v18 = vmax.f32 %v1340_v21, %v1341_v39  ;;  %v1790_v62 = vmax.f32 %v1788_v53, %v1789_v34  ;;  %v1824_v6 = vrot.slane %v1823_v37, 2  ;;  %v1351_v40 = vmax.f32 %v1349_v2, %v1350_v54  ;;  %v4144_v53 = vld [vmem:[#allocation10_spill] sm:$0xff] }
 0x1f4   :  { %v1799_v30 = vmax.f32 %v1797_v48, %v1798_v51  ;;  %v1362_v49 = vrot.slane %v1361_v10, 2  ;;  %v1810_v55 = vrot.slane %v1809_v3, 2  ;;  %v1358_v12 = vmax.f32 %v1356_v28, %v1357_v57 }
 0x1f5   :  { %v1343_v9 = vrot.slane %v1342_v18, 1  ;;  %v1791_v24 = vrot.slane %v1790_v62, 1  ;;  %v1806_v15 = vmax.f32 %v1804_v33, %v1805_v36  ;;  %v1381_v52 = vrot.slane %v1380_v0, 4 }
 0x1f6   :  { %v1829_v8 = vrot.slane %v1828_v4, 4  ;;  %v1377_v63 = vmax.f32 %v1375_v20, %v1376_v42  ;;  %v1825_v1 = vmax.f32 %v1823_v37, %v1824_v6  ;;  %v1917_v45 = vmax.f32 %v1351_v40, 0.0 }
 0x1f7   :  { %v1344_v56 = vmax.f32 %v1342_v18, %v1343_v9  ;;  %v1792_v23 = vmax.f32 %v1790_v62, %v1791_v24  ;;  %v1981_v31 = vmax.f32 %v1799_v30, 0.0  ;;  %v1363_v22 = vmax.f32 %v1361_v10, %v1362_v49  ;;  %v4148_v24 = vld [vmem:[#allocation33_spill] sm:$0xff] }
 0x1f8   :  { %v1811_v19 = vmax.f32 %v1809_v3, %v1810_v55  ;;  %v1918_v2 = vmax.f32 %v1358_v12, 0.0  ;;  %v1982_v48 = vmax.f32 %v1806_v15, 0.0  ;;  %v1382_v54 = vmax.f32 %v1380_v0, %v1381_v52  ;;  %v4149_v55 = vld [vmem:[#allocation34_spill] sm:$0xff] }
 0x1f9   :  { %v1916_v17 = vmax.f32 %v1344_v56, 0.0  ;;  %v1980_v41 = vmax.f32 %v1792_v23, 0.0  ;;  %v1830_v51 = vmax.f32 %v1828_v4, %v1829_v8  ;;  %v1378_v61 = vrot.slane %v1377_v63, 1 }
 0x1fa   :  { %v1826_v25 = vrot.slane %v1825_v1, 1  ;;  %v1364_v36 = vrot.slane %v1363_v22, 1  ;;  %v1812_v5 = vrot.slane %v1811_v19, 1  ;;  %v683_v58 = vadd.f32 %v3861_v60, %v4142_v11 }
 0x1fb   :  { %v2172_v28 = vsel %vm2127_vm8, %v1916_v17, %v3938_v32  ;;  %v2228_v33 = vsel %vm2127_vm8, %v1980_v41, %v3941_v46  ;;  %v1383_v32 = vrot.slane %v1382_v54, 2  ;;  %v1831_v46 = vrot.slane %v1830_v51, 2 }
 0x1fc   :  { %v2173_v59 = vsel %vm2129_vm9, %v1917_v45, %v2172_v28  ;;  %v2229_v27 = vsel %vm2129_vm9, %v1981_v31, %v2228_v33  ;;  %v939_v7 = vadd.f32 %v3861_v60, %v4143_v50  ;;  %v3987_v44 = vmax.f32 %v1377_v63, %v1378_v61 }
 0x1fd   :  { %v2174_v43 = vsel %vm2131_vm10, %v1918_v2, %v2173_v59  ;;  %v2230_v57 = vsel %vm2131_vm10, %v1982_v48, %v2229_v27  ;;  %v3989_v21 = vmax.f32 %v1825_v1, %v1826_v25  ;;  %v696_v47 = vadd.f32 %v3861_v60, %v4144_v53 }
 0x1fe   :  { %2260 = vst.msk [vmem:[%s4044_s3 + $0x30] sm:$0xff] %vm966_vm3, %v2174_v43  ;;  %2268 = vst.msk [vmem:[%s4044_s3 + $0x70] sm:$0xff] %vm966_vm3, %v2230_v57  ;;  %v952_v35 = vadd.f32 %v3861_v60, %v4145_v38  ;;  %v1366_v16 = vsel %vm966_vm3, %v683_v58, -inf  ;;  %v1814_v29 = vsel %vm966_vm3, %v939_v7, -inf  ;;  %v704_v14 = vadd.f32 %v3861_v60, %v4146_v26 }
 0x1ff   :  { %v960_v39 = vadd.f32 %v3861_v60, %v4147_v13  ;;  %v1365_v34 = vmax.f32 %v1363_v22, %v1364_v36  ;;  %v1813_v20 = vmax.f32 %v1811_v19, %v1812_v5  ;;  %v1367_v37 = vrot.slane %v1366_v16, 4 }
 0x200   :  { %v1815_v10 = vrot.slane %v1814_v29, 4  ;;  %v1384_v3 = vmax.f32 %v1382_v54, %v1383_v32  ;;  %v1832_v0 = vmax.f32 %v1830_v51, %v1831_v46  ;;  %v1387_v4 = vsel %vm966_vm3, %v696_v47, -inf }
 0x201   :  { %v1835_v18 = vsel %vm966_vm3, %v952_v35, -inf  ;;  %v1368_v62 = vmax.f32 %v1366_v16, %v1367_v37  ;;  %v1388_v6 = vrot.slane %v1387_v4, 4  ;;  %v1401_v30 = vsel %vm966_vm3, %v704_v14, -inf }
 0x202   :  { %v1816_v42 = vmax.f32 %v1814_v29, %v1815_v10  ;;  %v1836_v40 = vrot.slane %v1835_v18, 4  ;;  %v1849_v9 = vsel %vm966_vm3, %v960_v39, -inf  ;;  %v707_v49 = vadd.f32 %v3861_v60, %v4148_v24 }
 0x203   :  { %v963_v12 = vadd.f32 %v3861_v60, %v4149_v55  ;;  %v1369_v15 = vrot.slane %v1368_v62, 2  ;;  %v1389_v8 = vmax.f32 %v1387_v4, %v1388_v6  ;;  %v1385_v23 = vrot.slane %v1384_v3, 1 }
 0x204   :  { %v1817_v52 = vrot.slane %v1816_v42, 2  ;;  %v1837_v56 = vmax.f32 %v1835_v18, %v1836_v40  ;;  %v1833_v63 = vrot.slane %v1832_v0, 1  ;;  %v1408_v1 = vsel %vm966_vm3, %v707_v49, -inf  ;;  %v4151_v18 = vld [vmem:[#allocation11_spill] sm:$0xff] }
 0x205   :  { %v1856_v45 = vsel %vm966_vm3, %v963_v12, -inf  ;;  %v1370_v31 = vmax.f32 %v1368_v62, %v1369_v15  ;;  %v1390_v41 = vrot.slane %v1389_v8, 2  ;;  %v1921_v19 = vmax.f32 %v3987_v44, 0.0 }
 0x206   :  { %v1818_v17 = vmax.f32 %v1816_v42, %v1817_v52  ;;  %v1838_v22 = vrot.slane %v1837_v56, 2  ;;  %v1985_v2 = vmax.f32 %v3989_v21, 0.0  ;;  %v1402_v48 = vrot.slane %v1401_v30, 4 }
 0x207   :  { %v1850_v54 = vrot.slane %v1849_v9, 4  ;;  %v1371_v51 = vrot.slane %v1370_v31, 1  ;;  %v1391_v33 = vmax.f32 %v1389_v8, %v1390_v41  ;;  %v1386_v25 = vmax.f32 %v1384_v3, %v1385_v23 }
 0x208   :  { %v1819_v28 = vrot.slane %v1818_v17, 1  ;;  %v1839_v61 = vmax.f32 %v1837_v56, %v1838_v22  ;;  %v1834_v59 = vmax.f32 %v1832_v0, %v1833_v63  ;;  %v1409_v27 = vrot.slane %v1408_v1, 4  ;;  %v4150_v0 = vld [vmem:[#allocation35_spill] sm:$0xff] }
 0x209   :  { %v1857_v43 = vrot.slane %v1856_v45, 4  ;;  %v1372_v57 = vmax.f32 %v1370_v31, %v1371_v51  ;;  %v1392_v5 = vrot.slane %v1391_v33, 1  ;;  %v1919_v46 = vmax.f32 %v1365_v34, 0.0 }
 0x20a   :  { %v1820_v36 = vmax.f32 %v1818_v17, %v1819_v28  ;;  %v1840_v32 = vrot.slane %v1839_v61, 1  ;;  %v1983_v11 = vmax.f32 %v1813_v20, 0.0  ;;  %v1403_v58 = vmax.f32 %v1401_v30, %v1402_v48 }
 0x20b   :  { %v1851_v50 = vmax.f32 %v1849_v9, %v1850_v54  ;;  %v1920_v7 = vmax.f32 %v1372_v57, 0.0  ;;  %v1393_v21 = vmax.f32 %v1391_v33, %v1392_v5  ;;  %v1922_v47 = vmax.f32 %v1386_v25, 0.0 }
 0x20c   :  { %v1984_v44 = vmax.f32 %v1820_v36, 0.0  ;;  %v1841_v53 = vmax.f32 %v1839_v61, %v1840_v32  ;;  %v1986_v38 = vmax.f32 %v1834_v59, 0.0  ;;  %v1410_v35 = vmax.f32 %v1408_v1, %v1409_v27 }
 0x20d   :  { %v1858_v16 = vmax.f32 %v1856_v45, %v1857_v43  ;;  %v2175_v29 = vsel %vm2119_vm4, %v1920_v7, %v1919_v46  ;;  %v1923_v14 = vmax.f32 %v1393_v21, 0.0  ;;  %v1404_v20 = vrot.slane %v1403_v58, 2 }
 0x20e   :  { %v2231_v26 = vsel %vm2119_vm4, %v1984_v44, %v1983_v11  ;;  %v1987_v13 = vmax.f32 %v1841_v53, 0.0  ;;  %v2176_v39 = vsel %vm2121_vm5, %v1921_v19, %v2175_v29  ;;  %v1852_v37 = vrot.slane %v1851_v50, 2 }
 0x20f   :  { %v2232_v34 = vsel %vm2121_vm5, %v1985_v2, %v2231_v26  ;;  %v2177_v10 = vsel %vm2123_vm6, %v1922_v47, %v2176_v39  ;;  %v699_v4 = vadd.f32 %v3861_v60, %v4150_v0  ;;  %v955_v62 = vadd.f32 %v3861_v60, %v4151_v18 }
 0x210   :  { %v2233_v3 = vsel %vm2123_vm6, %v1986_v38, %v2232_v34  ;;  %v2178_v42 = vsel %vm2125_vm7, %v1923_v14, %v2177_v10  ;;  %v1411_v40 = vrot.slane %v1410_v35, 2  ;;  %v1859_v30 = vrot.slane %v1858_v16, 2 }
 0x211   :  { %v2234_v6 = vsel %vm2125_vm7, %v1987_v13, %v2233_v3  ;;  %v1394_v9 = vsel %vm966_vm3, %v699_v4, -inf  ;;  %v1842_v24 = vsel %vm966_vm3, %v955_v62, -inf  ;;  %v1405_v12 = vmax.f32 %v1403_v58, %v1404_v20 }
 0x212   :  { %v1395_v49 = vrot.slane %v1394_v9, 4  ;;  %v1843_v55 = vrot.slane %v1842_v24, 4  ;;  %v1853_v15 = vmax.f32 %v1851_v50, %v1852_v37  ;;  %v1412_v52 = vmax.f32 %v1410_v35, %v1411_v40 }
 0x213   :  { %v1860_v8 = vmax.f32 %v1858_v16, %v1859_v30  ;;  %v1406_v1 = vrot.slane %v1405_v12, 1 }
 0x214   :  { %v1396_v56 = vmax.f32 %v1394_v9, %v1395_v49  ;;  %v1844_v23 = vmax.f32 %v1842_v24, %v1843_v55  ;;  %v1854_v45 = vrot.slane %v1853_v15, 1  ;;  %v1413_v31 = vrot.slane %v1412_v52, 1 }
 0x215   :  { %v1861_v17 = vrot.slane %v1860_v8, 1  ;;  %v1407_v48 = vmax.f32 %v1405_v12, %v1406_v1 }
 0x216   :  { %v1397_v63 = vrot.slane %v1396_v56, 2  ;;  %v1845_v60 = vrot.slane %v1844_v23, 2  ;;  %v1855_v54 = vmax.f32 %v1853_v15, %v1854_v45  ;;  %v1414_v51 = vmax.f32 %v1412_v52, %v1413_v31 }
 0x217   :  { %v1862_v28 = vmax.f32 %v1860_v8, %v1861_v17  ;;  %v1925_v27 = vmax.f32 %v1407_v48, 0.0 }
 0x218   :  { %v1398_v41 = vmax.f32 %v1396_v56, %v1397_v63  ;;  %v1846_v22 = vmax.f32 %v1844_v23, %v1845_v60  ;;  %v1989_v43 = vmax.f32 %v1855_v54, 0.0  ;;  %v1926_v57 = vmax.f32 %v1414_v51, 0.0 }
 0x219   :  { %v1990_v36 = vmax.f32 %v1862_v28, 0.0 }
 0x21a   :  { %v1399_v19 = vrot.slane %v1398_v41, 1  ;;  %v1847_v2 = vrot.slane %v1846_v22, 1 }
 0x21c   :  { %v1400_v33 = vmax.f32 %v1398_v41, %v1399_v19  ;;  %v1848_v61 = vmax.f32 %v1846_v22, %v1847_v2 }
 0x21e   :  { %v1924_v25 = vmax.f32 %v1400_v33, 0.0  ;;  %v1988_v59 = vmax.f32 %v1848_v61, 0.0 }
 0x220   :  { %v2179_v5 = vsel %vm2127_vm8, %v1924_v25, %v2178_v42  ;;  %v2235_v32 = vsel %vm2127_vm8, %v1988_v59, %v2234_v6 }
 0x221   :  { %v2180_v46 = vsel %vm2129_vm9, %v1925_v27, %v2179_v5  ;;  %v2236_v11 = vsel %vm2129_vm9, %v1989_v43, %v2235_v32 }
 0x222   :  { %v2181_v58 = vsel %vm2131_vm10, %v1926_v57, %v2180_v46  ;;  %v2237_v50 = vsel %vm2131_vm10, %v1990_v36, %v2236_v11 }
 0x223   :  { %2261 = vst.msk [vmem:[%s4044_s3 + $0x38] sm:$0xff] %vm966_vm3, %v2181_v58  ;;  %2269 = vst.msk [vmem:[%s4044_s3 + $0x78] sm:$0xff] %vm966_vm3, %v2237_v50 }

</bundles_post_ra>
